<compile_context>
chip_gen: v7x
topology: tpu7x:2x2x1
jax: 0.10.0
libtpu: 0.0.40
codegen_flags: <defaults>
</compile_context>

<pallas_src>
import functools

import jax
import jax.numpy as jnp
from jax.experimental import pallas as pl
from jax.experimental.pallas import tpu as pltpu

# ---------------- model config (small, consistent with the module) -----------
D_MODEL = 32
N_HEAD = 4
DIM_FF = 64
NUM_LAYERS = 2
BATCH = 2
SEQ = 8
EPS = 1e-5

VEC_ROWS = 9                       # bqk, bv, bo, g1, be1, b1, b2, g2, be2
VEC_W = max(2 * D_MODEL, DIM_FF)   # widest packed vector row


# ---------------- Pallas kernel: full encoder stack, whole batch -------------
def _layer_norm(x, gamma, beta):
    mean = jnp.mean(x, axis=-1, keepdims=True)
    var = jnp.mean((x - mean) ** 2, axis=-1, keepdims=True)
    return (x - mean) * jax.lax.rsqrt(var + EPS) * gamma + beta


def fused_encoder_kernel(num_layers, B, S, H,
                         src_ref, pos_ref, wa_ref, w2_ref, vec_ref, out_ref):
    # src/pos: (B*S, D); wa: (L, D, 2D+D+D+FF); w2: (L, FF, D); vec: (L, 9, VEC_W)
    D = src_ref.shape[-1]
    hd = D // H
    FF = w2_ref.shape[1]

    src = src_ref[...]          # (B*S, D) f32, stays resident in VMEM across all layers
    pos = pos_ref[...]          # (B*S, D) f32

    for l in range(num_layers):                       # static unroll over fused layers
        wa = wa_ref[l]                                # (D, 2D + D + D + FF)
        wqk = wa[:, :2 * D]                           # [Wq*scale | Wk]
        wv = wa[:, 2 * D:3 * D]
        wo = wa[:, 3 * D:4 * D]
        w1 = wa[:, 4 * D:4 * D + FF]
        w2 = w2_ref[l]                                # (FF, D)

        vec = vec_ref[l]                              # (9, VEC_W)
        bqk = vec[0:1, :2 * D]
        bv = vec[1:2, :D]
        bo = vec[2:3, :D]
        g1 = vec[3:4, :D]
        be1 = vec[4:5, :D]
        b1 = vec[5:6, :FF]
        b2 = vec[6:7, :D]
        g2 = vec[7:8, :D]
        be2 = vec[8:9, :D]

        # ---- fused Q/K and V projections over the whole (B*S) row axis -------
        x = src + pos                                 # q = k = with_pos_embed(src, pos)
        qk = jnp.dot(x, wqk, preferred_element_type=jnp.float32) + bqk   # (B*S, 2D)
        v = jnp.dot(src, wv, preferred_element_type=jnp.float32) + bv    # (B*S, D)

        # ---- attention core: per-(batch, head) tiny matmuls (inherent at hd=8)
        ctx_rows = []
        for b in range(B):                            # static unroll, B tiny
            r0 = b * S
            head_ctx = []
            for h in range(H):                        # static unroll
                c0 = h * hd
                q_bh = qk[r0:r0 + S, c0:c0 + hd]              # (S, hd), scale folded
                k_bh = qk[r0:r0 + S, D + c0:D + c0 + hd]      # (S, hd)
                v_bh = v[r0:r0 + S, c0:c0 + hd]               # (S, hd)
                s_bh = jax.lax.dot_general(                   # q @ k^T  -> (S, S)
                    q_bh, k_bh, (((1,), (1,)), ((), ())),
                    preferred_element_type=jnp.float32)
                s_bh = s_bh - jnp.max(s_bh, axis=-1, keepdims=True)
                p_bh = jnp.exp(s_bh)
                p_bh = p_bh / jnp.sum(p_bh, axis=-1, keepdims=True)
                head_ctx.append(jnp.dot(p_bh, v_bh,
                                        preferred_element_type=jnp.float32))
            ctx_rows.append(jnp.concatenate(head_ctx, axis=-1))          # (S, D)
        ctx = jnp.concatenate(ctx_rows, axis=0)                          # (B*S, D)

        # ---- output projection: one K=D matmul (no per-head split / sum) -----
        attn = jnp.dot(ctx, wo, preferred_element_type=jnp.float32) + bo  # (B*S, D)

        # ---- residual + LayerNorm1, FFN, residual + LayerNorm2 (all f32) -----
        h1 = _layer_norm(src + attn, g1, be1)
        f = jnp.dot(h1, w1, preferred_element_type=jnp.float32) + b1
        f = jnp.maximum(f, 0.0)
        f = jnp.dot(f, w2, preferred_element_type=jnp.float32) + b2
        src = _layer_norm(h1 + f, g2, be2)

    # Single store of the whole (B*S, D) result.
    # TODO(synk): a (B, S*D) lane-dense output layout would need an in-kernel
    # relayout that likely costs more than the masked store at this size.
    out_ref[...] = src.astype(out_ref.dtype)


# ---------------- host-side parameter packing (3 slabs per stack) ------------
def _prep_params(layer_params_list):
    hd = D_MODEL // N_HEAD
    scale = 1.0 / (hd ** 0.5)
    wa_l, w2_l, vec_l = [], [], []

    def row(vv):
        vv = vv.reshape(-1)
        return jnp.pad(vv, (0, VEC_W - vv.shape[0]))

    for p in layer_params_list:
        # matmul-weight slab: [Wq*scale | Wk | Wv | Wo | W1]  -> (D, 2D+D+D+FF)
        wa = jnp.concatenate(
            [p["wq"] * scale, p["wk"], p["wv"], p["wo"], p["w1"]], axis=1)
        wa_l.append(wa)
        w2_l.append(p["w2"])
        vec = jnp.stack([
            row(jnp.concatenate([p["bq"].reshape(-1) * scale,
                                 p["bk"].reshape(-1)])),          # bqk (2D)
            row(p["bv"]), row(p["bo"]),
            row(p["g1"]), row(p["be1"]),
            row(p["b1"]), row(p["b2"]),
            row(p["g2"]), row(p["be2"]),
        ])                                                        # (9, VEC_W)
        vec_l.append(vec)
    return jnp.stack(wa_l), jnp.stack(w2_l), jnp.stack(vec_l)


# ---------------- wrapper: ONE pallas_call, no grid ---------------------------
def transformer_encoder(src, pos, layer_params_list):
    # mirrors TransformerEncoder.forward with mask=None, key_padding_mask=None,
    # norm=None, return_intermediate=False
    B, S, D = src.shape
    num_layers = len(layer_params_list)

    wa, w2, vec = _prep_params(layer_params_list)
    src_flat = src.reshape(B * S, D)
    pos_flat = pos.reshape(B * S, D)

    kernel = functools.partial(fused_encoder_kernel, num_layers, B, S, N_HEAD)
    vmem_spec = functools.partial(pl.BlockSpec,
                                  memory_space=pltpu.MemorySpace.VMEM)

    out_flat = pl.pallas_call(
        kernel,
        out_shape=jax.ShapeDtypeStruct((B * S, D), src.dtype),
        in_specs=[vmem_spec() for _ in range(5)],
        out_specs=vmem_spec(),
    )(src_flat, pos_flat, wa, w2, vec)

    return out_flat.reshape(B, S, D)

    # TODO(synk): src_mask / src_key_padding_mask (None in the module defaults),
    # return_intermediate=True stacking and an optional final LayerNorm can be layered
    # on this same fused kernel; the module defaults are what is implemented.


# ---------------- deterministic parameter init (PyTorch-like layout) ----------
def init_layer_params(key):
    ks = jax.random.split(key, 8)
    s = 0.05

    def w(k, shape):
        return jax.random.normal(k, shape, jnp.float32) * s

    return {
        # attention in-proj (stored pre-transposed: (D_in, D_out))
        "wq": w(ks[0], (D_MODEL, D_MODEL)), "bq": jnp.zeros((1, D_MODEL), jnp.float32),
        "wk": w(ks[1], (D_MODEL, D_MODEL)), "bk": jnp.zeros((1, D_MODEL), jnp.float32),
        "wv": w(ks[2], (D_MODEL, D_MODEL)), "bv": jnp.zeros((1, D_MODEL), jnp.float32),
        # attention out-proj
        "wo": w(ks[3], (D_MODEL, D_MODEL)), "bo": jnp.zeros((1, D_MODEL), jnp.float32),
        # LayerNorm1
        "g1": jnp.ones((1, D_MODEL), jnp.float32), "be1": jnp.zeros((1, D_MODEL), jnp.float32),
        # FFN
        "w1": w(ks[4], (D_MODEL, DIM_FF)), "b1": jnp.zeros((1, DIM_FF), jnp.float32),
        "w2": w(ks[5], (DIM_FF, D_MODEL)), "b2": jnp.zeros((1, D_MODEL), jnp.float32),
        # LayerNorm2
        "g2": jnp.ones((1, D_MODEL), jnp.float32), "be2": jnp.zeros((1, D_MODEL), jnp.float32),
    }


# ---------------- pure-JAX fp32 reference (for correctness check) -------------
def ref_layer(src, pos, p):
    x = src + pos
    q = x @ p["wq"] + p["bq"]
    k = x @ p["wk"] + p["bk"]
    v = src @ p["wv"] + p["bv"]
    B, S, D = src.shape
    hd = D // N_HEAD
    q = q.reshape(B, S, N_HEAD, hd).transpose(0, 2, 1, 3) * (hd ** -0.5)
    k = k.reshape(B, S, N_HEAD, hd).transpose(0, 2, 1, 3)
    v = v.reshape(B, S, N_HEAD, hd).transpose(0, 2, 1, 3)
    scores = jnp.einsum("bhqd,bhkd->bhqk", q, k)
    probs = jax.nn.softmax(scores, axis=-1)
    attn = jnp.einsum("bhqk,bhkd->bhqd", probs, v)
    attn = attn.transpose(0, 2, 1, 3).reshape(B, S, D)
    attn = attn @ p["wo"] + p["bo"]

    def ln(x, g, b):
        m = jnp.mean(x, -1, keepdims=True)
        var = jnp.mean((x - m) ** 2, -1, keepdims=True)
        return (x - m) / jnp.sqrt(var + EPS) * g + b

    h1 = ln(src + attn, p["g1"], p["be1"])
    f = jnp.maximum(h1 @ p["w1"] + p["b1"], 0.0) @ p["w2"] + p["b2"]
    return ln(h1 + f, p["g2"], p["be2"])


def ref_encoder(src, pos, layer_params_list):
    out = src
    for p in layer_params_list:
        out = ref_layer(out, pos, p)
    return out


# ---------------- main ---------------------------------------------------------
if __name__ == "__main__":
    key = jax.random.PRNGKey(0)
    k_src, k_pos, k_params = jax.random.split(key, 3)

    # layout: (B, S, D)
    src = jax.random.normal(k_src, (BATCH, SEQ, D_MODEL), jnp.float32)
    pos = jax.random.normal(k_pos, (BATCH, SEQ, D_MODEL), jnp.float32)

    layer_keys = jax.random.split(k_params, NUM_LAYERS)
    layer_params_list = [init_layer_params(k) for k in layer_keys]

    out = transformer_encoder(src, pos, layer_params_list)
    out = jax.block_until_ready(out)

    ref = jax.block_until_ready(ref_encoder(src, pos, layer_params_list))
    assert out.shape == (BATCH, SEQ, D_MODEL)
    # Kernel math is f32 end-to-end now (only MXU-internal pass differences remain),
    # so the tolerance vs. the pure-fp32 reference is tightened vs. the bf16 version.
    assert jnp.max(jnp.abs(out - ref)) < 1e-2, "mismatch vs pure-JAX reference"

    print("KERNEL_OK")
</pallas_src>

<mosaic_0001>
module attributes {stable_mosaic.version = 11 : i64} {
  func.func @fused_encoder_kernel(%arg0: memref<16x32xf32, #tpu.memory_space<vmem>>, %arg1: memref<16x32xf32, #tpu.memory_space<vmem>>, %arg2: memref<2x32x192xf32, #tpu.memory_space<vmem>>, %arg3: memref<2x64x32xf32, #tpu.memory_space<vmem>>, %arg4: memref<2x9x64xf32, #tpu.memory_space<vmem>>, %arg5: memref<16x32xf32, #tpu.memory_space<vmem>>) attributes {dimension_semantics = [], scalar_prefetch = 0 : i64, scratch_operands = 0 : i64, tpu.core_type = #tpu.core_type<tc>} {
    %c0 = arith.constant 0 : index
    %c0_0 = arith.constant 0 : index
    %0 = vector.load %arg0[%c0, %c0_0] : memref<16x32xf32, #tpu.memory_space<vmem>>, vector<16x32xf32>
    %c0_1 = arith.constant 0 : index
    %c0_2 = arith.constant 0 : index
    %1 = vector.load %arg1[%c0_1, %c0_2] : memref<16x32xf32, #tpu.memory_space<vmem>>, vector<16x32xf32>
    %c0_3 = arith.constant 0 : index
    %c0_4 = arith.constant 0 : index
    %c0_5 = arith.constant 0 : index
    %2 = vector.load %arg2[%c0_3, %c0_4, %c0_5] : memref<2x32x192xf32, #tpu.memory_space<vmem>>, vector<1x32x192xf32>
    %3 = vector.shape_cast %2 : vector<1x32x192xf32> to vector<32x192xf32>
    %4 = vector.extract_strided_slice %3 {offsets = [0, 0], sizes = [32, 64], strides = [1, 1]} : vector<32x192xf32> to vector<32x64xf32>
    %5 = vector.extract_strided_slice %3 {offsets = [0, 64], sizes = [32, 32], strides = [1, 1]} : vector<32x192xf32> to vector<32x32xf32>
    %6 = vector.extract_strided_slice %3 {offsets = [0, 96], sizes = [32, 32], strides = [1, 1]} : vector<32x192xf32> to vector<32x32xf32>
    %7 = vector.extract_strided_slice %3 {offsets = [0, 128], sizes = [32, 64], strides = [1, 1]} : vector<32x192xf32> to vector<32x64xf32>
    %c0_6 = arith.constant 0 : index
    %c0_7 = arith.constant 0 : index
    %c0_8 = arith.constant 0 : index
    %8 = vector.load %arg3[%c0_6, %c0_7, %c0_8] : memref<2x64x32xf32, #tpu.memory_space<vmem>>, vector<1x64x32xf32>
    %9 = vector.shape_cast %8 : vector<1x64x32xf32> to vector<64x32xf32>
    %c0_9 = arith.constant 0 : index
    %c0_10 = arith.constant 0 : index
    %c0_11 = arith.constant 0 : index
    %10 = vector.load %arg4[%c0_9, %c0_10, %c0_11] : memref<2x9x64xf32, #tpu.memory_space<vmem>>, vector<1x9x64xf32>
    %11 = vector.shape_cast %10 : vector<1x9x64xf32> to vector<9x64xf32>
    %12 = vector.extract_strided_slice %11 {offsets = [0, 0], sizes = [1, 64], strides = [1, 1]} : vector<9x64xf32> to vector<1x64xf32>
    %13 = vector.extract_strided_slice %11 {offsets = [1, 0], sizes = [1, 32], strides = [1, 1]} : vector<9x64xf32> to vector<1x32xf32>
    %14 = vector.extract_strided_slice %11 {offsets = [2, 0], sizes = [1, 32], strides = [1, 1]} : vector<9x64xf32> to vector<1x32xf32>
    %15 = vector.extract_strided_slice %11 {offsets = [3, 0], sizes = [1, 32], strides = [1, 1]} : vector<9x64xf32> to vector<1x32xf32>
    %16 = vector.extract_strided_slice %11 {offsets = [4, 0], sizes = [1, 32], strides = [1, 1]} : vector<9x64xf32> to vector<1x32xf32>
    %17 = vector.extract_strided_slice %11 {offsets = [5, 0], sizes = [1, 64], strides = [1, 1]} : vector<9x64xf32> to vector<1x64xf32>
    %18 = vector.extract_strided_slice %11 {offsets = [6, 0], sizes = [1, 32], strides = [1, 1]} : vector<9x64xf32> to vector<1x32xf32>
    %19 = vector.extract_strided_slice %11 {offsets = [7, 0], sizes = [1, 32], strides = [1, 1]} : vector<9x64xf32> to vector<1x32xf32>
    %20 = vector.extract_strided_slice %11 {offsets = [8, 0], sizes = [1, 32], strides = [1, 1]} : vector<9x64xf32> to vector<1x32xf32>
    %21 = arith.addf %0, %1 : vector<16x32xf32>
    %cst = arith.constant dense<0.000000e+00> : vector<16x64xf32>
    %22 = tpu.matmul %21, %4, %cst {dimension_numbers = #tpu.dot_dimension_numbers<[1], [0], [0], [1], [0, 0, 1, 1], [], []>} : vector<16x32xf32>, vector<32x64xf32>, vector<16x64xf32> -> vector<16x64xf32>
    %23 = vector.broadcast %12 : vector<1x64xf32> to vector<16x64xf32>
    %24 = arith.addf %22, %23 : vector<16x64xf32>
    %cst_12 = arith.constant dense<0.000000e+00> : vector<16x32xf32>
    %25 = tpu.matmul %0, %5, %cst_12 {dimension_numbers = #tpu.dot_dimension_numbers<[1], [0], [0], [1], [0, 0, 1, 1], [], []>} : vector<16x32xf32>, vector<32x32xf32>, vector<16x32xf32> -> vector<16x32xf32>
    %26 = vector.broadcast %13 : vector<1x32xf32> to vector<16x32xf32>
    %27 = arith.addf %25, %26 : vector<16x32xf32>
    %28 = vector.extract_strided_slice %24 {offsets = [0, 0], sizes = [8, 8], strides = [1, 1]} : vector<16x64xf32> to vector<8x8xf32>
    %29 = vector.extract_strided_slice %24 {offsets = [0, 32], sizes = [8, 8], strides = [1, 1]} : vector<16x64xf32> to vector<8x8xf32>
    %30 = vector.extract_strided_slice %27 {offsets = [0, 0], sizes = [8, 8], strides = [1, 1]} : vector<16x32xf32> to vector<8x8xf32>
    %cst_13 = arith.constant dense<0.000000e+00> : vector<8x8xf32>
    %31 = tpu.matmul %28, %29, %cst_13 {dimension_numbers = #tpu.dot_dimension_numbers<[1], [1], [0], [0], [0, 0, 1, 0], [], []>} : vector<8x8xf32>, vector<8x8xf32>, vector<8x8xf32> -> vector<8x8xf32>
    %cst_14 = arith.constant dense<0xFF800000> : vector<8xf32>
    %32 = vector.multi_reduction <maximumf>, %31, %cst_14 [1] : vector<8x8xf32> to vector<8xf32>
    %33 = vector.shape_cast %32 : vector<8xf32> to vector<8x1xf32>
    %34 = vector.broadcast %33 : vector<8x1xf32> to vector<8x8xf32>
    %35 = arith.subf %31, %34 : vector<8x8xf32>
    %36 = math.exp %35 : vector<8x8xf32>
    %cst_15 = arith.constant dense<0.000000e+00> : vector<8xf32>
    %37 = vector.multi_reduction <add>, %36, %cst_15 [1] : vector<8x8xf32> to vector<8xf32>
    %38 = vector.shape_cast %37 : vector<8xf32> to vector<8x1xf32>
    %39 = vector.broadcast %38 : vector<8x1xf32> to vector<8x8xf32>
    %40 = arith.divf %36, %39 : vector<8x8xf32>
    %cst_16 = arith.constant dense<0.000000e+00> : vector<8x8xf32>
    %41 = tpu.matmul %40, %30, %cst_16 {dimension_numbers = #tpu.dot_dimension_numbers<[1], [0], [0], [1], [0, 0, 1, 1], [], []>} : vector<8x8xf32>, vector<8x8xf32>, vector<8x8xf32> -> vector<8x8xf32>
    %42 = vector.extract_strided_slice %24 {offsets = [0, 8], sizes = [8, 8], strides = [1, 1]} : vector<16x64xf32> to vector<8x8xf32>
    %43 = vector.extract_strided_slice %24 {offsets = [0, 40], sizes = [8, 8], strides = [1, 1]} : vector<16x64xf32> to vector<8x8xf32>
    %44 = vector.extract_strided_slice %27 {offsets = [0, 8], sizes = [8, 8], strides = [1, 1]} : vector<16x32xf32> to vector<8x8xf32>
    %cst_17 = arith.constant dense<0.000000e+00> : vector<8x8xf32>
    %45 = tpu.matmul %42, %43, %cst_17 {dimension_numbers = #tpu.dot_dimension_numbers<[1], [1], [0], [0], [0, 0, 1, 0], [], []>} : vector<8x8xf32>, vector<8x8xf32>, vector<8x8xf32> -> vector<8x8xf32>
    %cst_18 = arith.constant dense<0xFF800000> : vector<8xf32>
    %46 = vector.multi_reduction <maximumf>, %45, %cst_18 [1] : vector<8x8xf32> to vector<8xf32>
    %47 = vector.shape_cast %46 : vector<8xf32> to vector<8x1xf32>
    %48 = vector.broadcast %47 : vector<8x1xf32> to vector<8x8xf32>
    %49 = arith.subf %45, %48 : vector<8x8xf32>
    %50 = math.exp %49 : vector<8x8xf32>
    %cst_19 = arith.constant dense<0.000000e+00> : vector<8xf32>
    %51 = vector.multi_reduction <add>, %50, %cst_19 [1] : vector<8x8xf32> to vector<8xf32>
    %52 = vector.shape_cast %51 : vector<8xf32> to vector<8x1xf32>
    %53 = vector.broadcast %52 : vector<8x1xf32> to vector<8x8xf32>
    %54 = arith.divf %50, %53 : vector<8x8xf32>
    %cst_20 = arith.constant dense<0.000000e+00> : vector<8x8xf32>
    %55 = tpu.matmul %54, %44, %cst_20 {dimension_numbers = #tpu.dot_dimension_numbers<[1], [0], [0], [1], [0, 0, 1, 1], [], []>} : vector<8x8xf32>, vector<8x8xf32>, vector<8x8xf32> -> vector<8x8xf32>
    %56 = vector.extract_strided_slice %24 {offsets = [0, 16], sizes = [8, 8], strides = [1, 1]} : vector<16x64xf32> to vector<8x8xf32>
    %57 = vector.extract_strided_slice %24 {offsets = [0, 48], sizes = [8, 8], strides = [1, 1]} : vector<16x64xf32> to vector<8x8xf32>
    %58 = vector.extract_strided_slice %27 {offsets = [0, 16], sizes = [8, 8], strides = [1, 1]} : vector<16x32xf32> to vector<8x8xf32>
    %cst_21 = arith.constant dense<0.000000e+00> : vector<8x8xf32>
    %59 = tpu.matmul %56, %57, %cst_21 {dimension_numbers = #tpu.dot_dimension_numbers<[1], [1], [0], [0], [0, 0, 1, 0], [], []>} : vector<8x8xf32>, vector<8x8xf32>, vector<8x8xf32> -> vector<8x8xf32>
    %cst_22 = arith.constant dense<0xFF800000> : vector<8xf32>
    %60 = vector.multi_reduction <maximumf>, %59, %cst_22 [1] : vector<8x8xf32> to vector<8xf32>
    %61 = vector.shape_cast %60 : vector<8xf32> to vector<8x1xf32>
    %62 = vector.broadcast %61 : vector<8x1xf32> to vector<8x8xf32>
    %63 = arith.subf %59, %62 : vector<8x8xf32>
    %64 = math.exp %63 : vector<8x8xf32>
    %cst_23 = arith.constant dense<0.000000e+00> : vector<8xf32>
    %65 = vector.multi_reduction <add>, %64, %cst_23 [1] : vector<8x8xf32> to vector<8xf32>
    %66 = vector.shape_cast %65 : vector<8xf32> to vector<8x1xf32>
    %67 = vector.broadcast %66 : vector<8x1xf32> to vector<8x8xf32>
    %68 = arith.divf %64, %67 : vector<8x8xf32>
    %cst_24 = arith.constant dense<0.000000e+00> : vector<8x8xf32>
    %69 = tpu.matmul %68, %58, %cst_24 {dimension_numbers = #tpu.dot_dimension_numbers<[1], [0], [0], [1], [0, 0, 1, 1], [], []>} : vector<8x8xf32>, vector<8x8xf32>, vector<8x8xf32> -> vector<8x8xf32>
    %70 = vector.extract_strided_slice %24 {offsets = [0, 24], sizes = [8, 8], strides = [1, 1]} : vector<16x64xf32> to vector<8x8xf32>
    %71 = vector.extract_strided_slice %24 {offsets = [0, 56], sizes = [8, 8], strides = [1, 1]} : vector<16x64xf32> to vector<8x8xf32>
    %72 = vector.extract_strided_slice %27 {offsets = [0, 24], sizes = [8, 8], strides = [1, 1]} : vector<16x32xf32> to vector<8x8xf32>
    %cst_25 = arith.constant dense<0.000000e+00> : vector<8x8xf32>
    %73 = tpu.matmul %70, %71, %cst_25 {dimension_numbers = #tpu.dot_dimension_numbers<[1], [1], [0], [0], [0, 0, 1, 0], [], []>} : vector<8x8xf32>, vector<8x8xf32>, vector<8x8xf32> -> vector<8x8xf32>
    %cst_26 = arith.constant dense<0xFF800000> : vector<8xf32>
    %74 = vector.multi_reduction <maximumf>, %73, %cst_26 [1] : vector<8x8xf32> to vector<8xf32>
    %75 = vector.shape_cast %74 : vector<8xf32> to vector<8x1xf32>
    %76 = vector.broadcast %75 : vector<8x1xf32> to vector<8x8xf32>
    %77 = arith.subf %73, %76 : vector<8x8xf32>
    %78 = math.exp %77 : vector<8x8xf32>
    %cst_27 = arith.constant dense<0.000000e+00> : vector<8xf32>
    %79 = vector.multi_reduction <add>, %78, %cst_27 [1] : vector<8x8xf32> to vector<8xf32>
    %80 = vector.shape_cast %79 : vector<8xf32> to vector<8x1xf32>
    %81 = vector.broadcast %80 : vector<8x1xf32> to vector<8x8xf32>
    %82 = arith.divf %78, %81 : vector<8x8xf32>
    %cst_28 = arith.constant dense<0.000000e+00> : vector<8x8xf32>
    %83 = tpu.matmul %82, %72, %cst_28 {dimension_numbers = #tpu.dot_dimension_numbers<[1], [0], [0], [1], [0, 0, 1, 1], [], []>} : vector<8x8xf32>, vector<8x8xf32>, vector<8x8xf32> -> vector<8x8xf32>
    %84 = tpu.concatenate %41, %55, %69, %83 in 1 : vector<8x8xf32>, vector<8x8xf32>, vector<8x8xf32>, vector<8x8xf32> -> vector<8x32xf32>
    %85 = vector.extract_strided_slice %24 {offsets = [8, 0], sizes = [8, 8], strides = [1, 1]} : vector<16x64xf32> to vector<8x8xf32>
    %86 = vector.extract_strided_slice %24 {offsets = [8, 32], sizes = [8, 8], strides = [1, 1]} : vector<16x64xf32> to vector<8x8xf32>
    %87 = vector.extract_strided_slice %27 {offsets = [8, 0], sizes = [8, 8], strides = [1, 1]} : vector<16x32xf32> to vector<8x8xf32>
    %cst_29 = arith.constant dense<0.000000e+00> : vector<8x8xf32>
    %88 = tpu.matmul %85, %86, %cst_29 {dimension_numbers = #tpu.dot_dimension_numbers<[1], [1], [0], [0], [0, 0, 1, 0], [], []>} : vector<8x8xf32>, vector<8x8xf32>, vector<8x8xf32> -> vector<8x8xf32>
    %cst_30 = arith.constant dense<0xFF800000> : vector<8xf32>
    %89 = vector.multi_reduction <maximumf>, %88, %cst_30 [1] : vector<8x8xf32> to vector<8xf32>
    %90 = vector.shape_cast %89 : vector<8xf32> to vector<8x1xf32>
    %91 = vector.broadcast %90 : vector<8x1xf32> to vector<8x8xf32>
    %92 = arith.subf %88, %91 : vector<8x8xf32>
    %93 = math.exp %92 : vector<8x8xf32>
    %cst_31 = arith.constant dense<0.000000e+00> : vector<8xf32>
    %94 = vector.multi_reduction <add>, %93, %cst_31 [1] : vector<8x8xf32> to vector<8xf32>
    %95 = vector.shape_cast %94 : vector<8xf32> to vector<8x1xf32>
    %96 = vector.broadcast %95 : vector<8x1xf32> to vector<8x8xf32>
    %97 = arith.divf %93, %96 : vector<8x8xf32>
    %cst_32 = arith.constant dense<0.000000e+00> : vector<8x8xf32>
    %98 = tpu.matmul %97, %87, %cst_32 {dimension_numbers = #tpu.dot_dimension_numbers<[1], [0], [0], [1], [0, 0, 1, 1], [], []>} : vector<8x8xf32>, vector<8x8xf32>, vector<8x8xf32> -> vector<8x8xf32>
    %99 = vector.extract_strided_slice %24 {offsets = [8, 8], sizes = [8, 8], strides = [1, 1]} : vector<16x64xf32> to vector<8x8xf32>
    %100 = vector.extract_strided_slice %24 {offsets = [8, 40], sizes = [8, 8], strides = [1, 1]} : vector<16x64xf32> to vector<8x8xf32>
    %101 = vector.extract_strided_slice %27 {offsets = [8, 8], sizes = [8, 8], strides = [1, 1]} : vector<16x32xf32> to vector<8x8xf32>
    %cst_33 = arith.constant dense<0.000000e+00> : vector<8x8xf32>
    %102 = tpu.matmul %99, %100, %cst_33 {dimension_numbers = #tpu.dot_dimension_numbers<[1], [1], [0], [0], [0, 0, 1, 0], [], []>} : vector<8x8xf32>, vector<8x8xf32>, vector<8x8xf32> -> vector<8x8xf32>
    %cst_34 = arith.constant dense<0xFF800000> : vector<8xf32>
    %103 = vector.multi_reduction <maximumf>, %102, %cst_34 [1] : vector<8x8xf32> to vector<8xf32>
    %104 = vector.shape_cast %103 : vector<8xf32> to vector<8x1xf32>
    %105 = vector.broadcast %104 : vector<8x1xf32> to vector<8x8xf32>
    %106 = arith.subf %102, %105 : vector<8x8xf32>
    %107 = math.exp %106 : vector<8x8xf32>
    %cst_35 = arith.constant dense<0.000000e+00> : vector<8xf32>
    %108 = vector.multi_reduction <add>, %107, %cst_35 [1] : vector<8x8xf32> to vector<8xf32>
    %109 = vector.shape_cast %108 : vector<8xf32> to vector<8x1xf32>
    %110 = vector.broadcast %109 : vector<8x1xf32> to vector<8x8xf32>
    %111 = arith.divf %107, %110 : vector<8x8xf32>
    %cst_36 = arith.constant dense<0.000000e+00> : vector<8x8xf32>
    %112 = tpu.matmul %111, %101, %cst_36 {dimension_numbers = #tpu.dot_dimension_numbers<[1], [0], [0], [1], [0, 0, 1, 1], [], []>} : vector<8x8xf32>, vector<8x8xf32>, vector<8x8xf32> -> vector<8x8xf32>
    %113 = vector.extract_strided_slice %24 {offsets = [8, 16], sizes = [8, 8], strides = [1, 1]} : vector<16x64xf32> to vector<8x8xf32>
    %114 = vector.extract_strided_slice %24 {offsets = [8, 48], sizes = [8, 8], strides = [1, 1]} : vector<16x64xf32> to vector<8x8xf32>
    %115 = vector.extract_strided_slice %27 {offsets = [8, 16], sizes = [8, 8], strides = [1, 1]} : vector<16x32xf32> to vector<8x8xf32>
    %cst_37 = arith.constant dense<0.000000e+00> : vector<8x8xf32>
    %116 = tpu.matmul %113, %114, %cst_37 {dimension_numbers = #tpu.dot_dimension_numbers<[1], [1], [0], [0], [0, 0, 1, 0], [], []>} : vector<8x8xf32>, vector<8x8xf32>, vector<8x8xf32> -> vector<8x8xf32>
    %cst_38 = arith.constant dense<0xFF800000> : vector<8xf32>
    %117 = vector.multi_reduction <maximumf>, %116, %cst_38 [1] : vector<8x8xf32> to vector<8xf32>
    %118 = vector.shape_cast %117 : vector<8xf32> to vector<8x1xf32>
    %119 = vector.broadcast %118 : vector<8x1xf32> to vector<8x8xf32>
    %120 = arith.subf %116, %119 : vector<8x8xf32>
    %121 = math.exp %120 : vector<8x8xf32>
    %cst_39 = arith.constant dense<0.000000e+00> : vector<8xf32>
    %122 = vector.multi_reduction <add>, %121, %cst_39 [1] : vector<8x8xf32> to vector<8xf32>
    %123 = vector.shape_cast %122 : vector<8xf32> to vector<8x1xf32>
    %124 = vector.broadcast %123 : vector<8x1xf32> to vector<8x8xf32>
    %125 = arith.divf %121, %124 : vector<8x8xf32>
    %cst_40 = arith.constant dense<0.000000e+00> : vector<8x8xf32>
    %126 = tpu.matmul %125, %115, %cst_40 {dimension_numbers = #tpu.dot_dimension_numbers<[1], [0], [0], [1], [0, 0, 1, 1], [], []>} : vector<8x8xf32>, vector<8x8xf32>, vector<8x8xf32> -> vector<8x8xf32>
    %127 = vector.extract_strided_slice %24 {offsets = [8, 24], sizes = [8, 8], strides = [1, 1]} : vector<16x64xf32> to vector<8x8xf32>
    %128 = vector.extract_strided_slice %24 {offsets = [8, 56], sizes = [8, 8], strides = [1, 1]} : vector<16x64xf32> to vector<8x8xf32>
    %129 = vector.extract_strided_slice %27 {offsets = [8, 24], sizes = [8, 8], strides = [1, 1]} : vector<16x32xf32> to vector<8x8xf32>
    %cst_41 = arith.constant dense<0.000000e+00> : vector<8x8xf32>
    %130 = tpu.matmul %127, %128, %cst_41 {dimension_numbers = #tpu.dot_dimension_numbers<[1], [1], [0], [0], [0, 0, 1, 0], [], []>} : vector<8x8xf32>, vector<8x8xf32>, vector<8x8xf32> -> vector<8x8xf32>
    %cst_42 = arith.constant dense<0xFF800000> : vector<8xf32>
    %131 = vector.multi_reduction <maximumf>, %130, %cst_42 [1] : vector<8x8xf32> to vector<8xf32>
    %132 = vector.shape_cast %131 : vector<8xf32> to vector<8x1xf32>
    %133 = vector.broadcast %132 : vector<8x1xf32> to vector<8x8xf32>
    %134 = arith.subf %130, %133 : vector<8x8xf32>
    %135 = math.exp %134 : vector<8x8xf32>
    %cst_43 = arith.constant dense<0.000000e+00> : vector<8xf32>
    %136 = vector.multi_reduction <add>, %135, %cst_43 [1] : vector<8x8xf32> to vector<8xf32>
    %137 = vector.shape_cast %136 : vector<8xf32> to vector<8x1xf32>
    %138 = vector.broadcast %137 : vector<8x1xf32> to vector<8x8xf32>
    %139 = arith.divf %135, %138 : vector<8x8xf32>
    %cst_44 = arith.constant dense<0.000000e+00> : vector<8x8xf32>
    %140 = tpu.matmul %139, %129, %cst_44 {dimension_numbers = #tpu.dot_dimension_numbers<[1], [0], [0], [1], [0, 0, 1, 1], [], []>} : vector<8x8xf32>, vector<8x8xf32>, vector<8x8xf32> -> vector<8x8xf32>
    %141 = tpu.concatenate %98, %112, %126, %140 in 1 : vector<8x8xf32>, vector<8x8xf32>, vector<8x8xf32>, vector<8x8xf32> -> vector<8x32xf32>
    %142 = tpu.concatenate %84, %141 in 0 : vector<8x32xf32>, vector<8x32xf32> -> vector<16x32xf32>
    %cst_45 = arith.constant dense<0.000000e+00> : vector<16x32xf32>
    %143 = tpu.matmul %142, %6, %cst_45 {dimension_numbers = #tpu.dot_dimension_numbers<[1], [0], [0], [1], [0, 0, 1, 1], [], []>} : vector<16x32xf32>, vector<32x32xf32>, vector<16x32xf32> -> vector<16x32xf32>
    %144 = vector.broadcast %14 : vector<1x32xf32> to vector<16x32xf32>
    %145 = arith.addf %143, %144 : vector<16x32xf32>
    %146 = arith.addf %0, %145 : vector<16x32xf32>
    %cst_46 = arith.constant dense<0.000000e+00> : vector<16xf32>
    %147 = vector.multi_reduction <add>, %146, %cst_46 [1] : vector<16x32xf32> to vector<16xf32>
    %148 = vector.shape_cast %147 : vector<16xf32> to vector<16x1xf32>
    %cst_47 = arith.constant 3.200000e+01 : f32
    %149 = vector.broadcast %cst_47 : f32 to vector<16x1xf32>
    %150 = arith.divf %148, %149 : vector<16x1xf32>
    %151 = vector.broadcast %150 : vector<16x1xf32> to vector<16x32xf32>
    %152 = arith.subf %146, %151 : vector<16x32xf32>
    %153 = arith.mulf %152, %152 : vector<16x32xf32>
    %cst_48 = arith.constant dense<0.000000e+00> : vector<16xf32>
    %154 = vector.multi_reduction <add>, %153, %cst_48 [1] : vector<16x32xf32> to vector<16xf32>
    %155 = vector.shape_cast %154 : vector<16xf32> to vector<16x1xf32>
    %cst_49 = arith.constant 3.200000e+01 : f32
    %156 = vector.broadcast %cst_49 : f32 to vector<16x1xf32>
    %157 = arith.divf %155, %156 : vector<16x1xf32>
    %158 = vector.broadcast %150 : vector<16x1xf32> to vector<16x32xf32>
    %159 = arith.subf %146, %158 : vector<16x32xf32>
    %cst_50 = arith.constant 9.99999974E-6 : f32
    %160 = vector.broadcast %cst_50 : f32 to vector<16x1xf32>
    %161 = arith.addf %157, %160 : vector<16x1xf32>
    %162 = math.rsqrt %161 : vector<16x1xf32>
    %163 = vector.broadcast %162 : vector<16x1xf32> to vector<16x32xf32>
    %164 = arith.mulf %159, %163 : vector<16x32xf32>
    %165 = vector.broadcast %15 : vector<1x32xf32> to vector<16x32xf32>
    %166 = arith.mulf %164, %165 : vector<16x32xf32>
    %167 = vector.broadcast %16 : vector<1x32xf32> to vector<16x32xf32>
    %168 = arith.addf %166, %167 : vector<16x32xf32>
    %cst_51 = arith.constant dense<0.000000e+00> : vector<16x64xf32>
    %169 = tpu.matmul %168, %7, %cst_51 {dimension_numbers = #tpu.dot_dimension_numbers<[1], [0], [0], [1], [0, 0, 1, 1], [], []>} : vector<16x32xf32>, vector<32x64xf32>, vector<16x64xf32> -> vector<16x64xf32>
    %170 = vector.broadcast %17 : vector<1x64xf32> to vector<16x64xf32>
    %171 = arith.addf %169, %170 : vector<16x64xf32>
    %cst_52 = arith.constant 0.000000e+00 : f32
    %172 = vector.broadcast %cst_52 : f32 to vector<16x64xf32>
    %173 = arith.maximumf %171, %172 : vector<16x64xf32>
    %cst_53 = arith.constant dense<0.000000e+00> : vector<16x32xf32>
    %174 = tpu.matmul %173, %9, %cst_53 {dimension_numbers = #tpu.dot_dimension_numbers<[1], [0], [0], [1], [0, 0, 1, 1], [], []>} : vector<16x64xf32>, vector<64x32xf32>, vector<16x32xf32> -> vector<16x32xf32>
    %175 = vector.broadcast %18 : vector<1x32xf32> to vector<16x32xf32>
    %176 = arith.addf %174, %175 : vector<16x32xf32>
    %177 = arith.addf %168, %176 : vector<16x32xf32>
    %cst_54 = arith.constant dense<0.000000e+00> : vector<16xf32>
    %178 = vector.multi_reduction <add>, %177, %cst_54 [1] : vector<16x32xf32> to vector<16xf32>
    %179 = vector.shape_cast %178 : vector<16xf32> to vector<16x1xf32>
    %cst_55 = arith.constant 3.200000e+01 : f32
    %180 = vector.broadcast %cst_55 : f32 to vector<16x1xf32>
    %181 = arith.divf %179, %180 : vector<16x1xf32>
    %182 = vector.broadcast %181 : vector<16x1xf32> to vector<16x32xf32>
    %183 = arith.subf %177, %182 : vector<16x32xf32>
    %184 = arith.mulf %183, %183 : vector<16x32xf32>
    %cst_56 = arith.constant dense<0.000000e+00> : vector<16xf32>
    %185 = vector.multi_reduction <add>, %184, %cst_56 [1] : vector<16x32xf32> to vector<16xf32>
    %186 = vector.shape_cast %185 : vector<16xf32> to vector<16x1xf32>
    %cst_57 = arith.constant 3.200000e+01 : f32
    %187 = vector.broadcast %cst_57 : f32 to vector<16x1xf32>
    %188 = arith.divf %186, %187 : vector<16x1xf32>
    %189 = vector.broadcast %181 : vector<16x1xf32> to vector<16x32xf32>
    %190 = arith.subf %177, %189 : vector<16x32xf32>
    %cst_58 = arith.constant 9.99999974E-6 : f32
    %191 = vector.broadcast %cst_58 : f32 to vector<16x1xf32>
    %192 = arith.addf %188, %191 : vector<16x1xf32>
    %193 = math.rsqrt %192 : vector<16x1xf32>
    %194 = vector.broadcast %193 : vector<16x1xf32> to vector<16x32xf32>
    %195 = arith.mulf %190, %194 : vector<16x32xf32>
    %196 = vector.broadcast %19 : vector<1x32xf32> to vector<16x32xf32>
    %197 = arith.mulf %195, %196 : vector<16x32xf32>
    %198 = vector.broadcast %20 : vector<1x32xf32> to vector<16x32xf32>
    %199 = arith.addf %197, %198 : vector<16x32xf32>
    %c1 = arith.constant 1 : index
    %c0_59 = arith.constant 0 : index
    %c0_60 = arith.constant 0 : index
    %200 = vector.load %arg2[%c1, %c0_59, %c0_60] : memref<2x32x192xf32, #tpu.memory_space<vmem>>, vector<1x32x192xf32>
    %201 = vector.shape_cast %200 : vector<1x32x192xf32> to vector<32x192xf32>
    %202 = vector.extract_strided_slice %201 {offsets = [0, 0], sizes = [32, 64], strides = [1, 1]} : vector<32x192xf32> to vector<32x64xf32>
    %203 = vector.extract_strided_slice %201 {offsets = [0, 64], sizes = [32, 32], strides = [1, 1]} : vector<32x192xf32> to vector<32x32xf32>
    %204 = vector.extract_strided_slice %201 {offsets = [0, 96], sizes = [32, 32], strides = [1, 1]} : vector<32x192xf32> to vector<32x32xf32>
    %205 = vector.extract_strided_slice %201 {offsets = [0, 128], sizes = [32, 64], strides = [1, 1]} : vector<32x192xf32> to vector<32x64xf32>
    %c1_61 = arith.constant 1 : index
    %c0_62 = arith.constant 0 : index
    %c0_63 = arith.constant 0 : index
    %206 = vector.load %arg3[%c1_61, %c0_62, %c0_63] : memref<2x64x32xf32, #tpu.memory_space<vmem>>, vector<1x64x32xf32>
    %207 = vector.shape_cast %206 : vector<1x64x32xf32> to vector<64x32xf32>
    %c1_64 = arith.constant 1 : index
    %c0_65 = arith.constant 0 : index
    %c0_66 = arith.constant 0 : index
    %208 = vector.load %arg4[%c1_64, %c0_65, %c0_66] : memref<2x9x64xf32, #tpu.memory_space<vmem>>, vector<1x9x64xf32>
    %209 = vector.shape_cast %208 : vector<1x9x64xf32> to vector<9x64xf32>
    %210 = vector.extract_strided_slice %209 {offsets = [0, 0], sizes = [1, 64], strides = [1, 1]} : vector<9x64xf32> to vector<1x64xf32>
    %211 = vector.extract_strided_slice %209 {offsets = [1, 0], sizes = [1, 32], strides = [1, 1]} : vector<9x64xf32> to vector<1x32xf32>
    %212 = vector.extract_strided_slice %209 {offsets = [2, 0], sizes = [1, 32], strides = [1, 1]} : vector<9x64xf32> to vector<1x32xf32>
    %213 = vector.extract_strided_slice %209 {offsets = [3, 0], sizes = [1, 32], strides = [1, 1]} : vector<9x64xf32> to vector<1x32xf32>
    %214 = vector.extract_strided_slice %209 {offsets = [4, 0], sizes = [1, 32], strides = [1, 1]} : vector<9x64xf32> to vector<1x32xf32>
    %215 = vector.extract_strided_slice %209 {offsets = [5, 0], sizes = [1, 64], strides = [1, 1]} : vector<9x64xf32> to vector<1x64xf32>
    %216 = vector.extract_strided_slice %209 {offsets = [6, 0], sizes = [1, 32], strides = [1, 1]} : vector<9x64xf32> to vector<1x32xf32>
    %217 = vector.extract_strided_slice %209 {offsets = [7, 0], sizes = [1, 32], strides = [1, 1]} : vector<9x64xf32> to vector<1x32xf32>
    %218 = vector.extract_strided_slice %209 {offsets = [8, 0], sizes = [1, 32], strides = [1, 1]} : vector<9x64xf32> to vector<1x32xf32>
    %219 = arith.addf %199, %1 : vector<16x32xf32>
    %cst_67 = arith.constant dense<0.000000e+00> : vector<16x64xf32>
    %220 = tpu.matmul %219, %202, %cst_67 {dimension_numbers = #tpu.dot_dimension_numbers<[1], [0], [0], [1], [0, 0, 1, 1], [], []>} : vector<16x32xf32>, vector<32x64xf32>, vector<16x64xf32> -> vector<16x64xf32>
    %221 = vector.broadcast %210 : vector<1x64xf32> to vector<16x64xf32>
    %222 = arith.addf %220, %221 : vector<16x64xf32>
    %cst_68 = arith.constant dense<0.000000e+00> : vector<16x32xf32>
    %223 = tpu.matmul %199, %203, %cst_68 {dimension_numbers = #tpu.dot_dimension_numbers<[1], [0], [0], [1], [0, 0, 1, 1], [], []>} : vector<16x32xf32>, vector<32x32xf32>, vector<16x32xf32> -> vector<16x32xf32>
    %224 = vector.broadcast %211 : vector<1x32xf32> to vector<16x32xf32>
    %225 = arith.addf %223, %224 : vector<16x32xf32>
    %226 = vector.extract_strided_slice %222 {offsets = [0, 0], sizes = [8, 8], strides = [1, 1]} : vector<16x64xf32> to vector<8x8xf32>
    %227 = vector.extract_strided_slice %222 {offsets = [0, 32], sizes = [8, 8], strides = [1, 1]} : vector<16x64xf32> to vector<8x8xf32>
    %228 = vector.extract_strided_slice %225 {offsets = [0, 0], sizes = [8, 8], strides = [1, 1]} : vector<16x32xf32> to vector<8x8xf32>
    %cst_69 = arith.constant dense<0.000000e+00> : vector<8x8xf32>
    %229 = tpu.matmul %226, %227, %cst_69 {dimension_numbers = #tpu.dot_dimension_numbers<[1], [1], [0], [0], [0, 0, 1, 0], [], []>} : vector<8x8xf32>, vector<8x8xf32>, vector<8x8xf32> -> vector<8x8xf32>
    %cst_70 = arith.constant dense<0xFF800000> : vector<8xf32>
    %230 = vector.multi_reduction <maximumf>, %229, %cst_70 [1] : vector<8x8xf32> to vector<8xf32>
    %231 = vector.shape_cast %230 : vector<8xf32> to vector<8x1xf32>
    %232 = vector.broadcast %231 : vector<8x1xf32> to vector<8x8xf32>
    %233 = arith.subf %229, %232 : vector<8x8xf32>
    %234 = math.exp %233 : vector<8x8xf32>
    %cst_71 = arith.constant dense<0.000000e+00> : vector<8xf32>
    %235 = vector.multi_reduction <add>, %234, %cst_71 [1] : vector<8x8xf32> to vector<8xf32>
    %236 = vector.shape_cast %235 : vector<8xf32> to vector<8x1xf32>
    %237 = vector.broadcast %236 : vector<8x1xf32> to vector<8x8xf32>
    %238 = arith.divf %234, %237 : vector<8x8xf32>
    %cst_72 = arith.constant dense<0.000000e+00> : vector<8x8xf32>
    %239 = tpu.matmul %238, %228, %cst_72 {dimension_numbers = #tpu.dot_dimension_numbers<[1], [0], [0], [1], [0, 0, 1, 1], [], []>} : vector<8x8xf32>, vector<8x8xf32>, vector<8x8xf32> -> vector<8x8xf32>
    %240 = vector.extract_strided_slice %222 {offsets = [0, 8], sizes = [8, 8], strides = [1, 1]} : vector<16x64xf32> to vector<8x8xf32>
    %241 = vector.extract_strided_slice %222 {offsets = [0, 40], sizes = [8, 8], strides = [1, 1]} : vector<16x64xf32> to vector<8x8xf32>
    %242 = vector.extract_strided_slice %225 {offsets = [0, 8], sizes = [8, 8], strides = [1, 1]} : vector<16x32xf32> to vector<8x8xf32>
    %cst_73 = arith.constant dense<0.000000e+00> : vector<8x8xf32>
    %243 = tpu.matmul %240, %241, %cst_73 {dimension_numbers = #tpu.dot_dimension_numbers<[1], [1], [0], [0], [0, 0, 1, 0], [], []>} : vector<8x8xf32>, vector<8x8xf32>, vector<8x8xf32> -> vector<8x8xf32>
    %cst_74 = arith.constant dense<0xFF800000> : vector<8xf32>
    %244 = vector.multi_reduction <maximumf>, %243, %cst_74 [1] : vector<8x8xf32> to vector<8xf32>
    %245 = vector.shape_cast %244 : vector<8xf32> to vector<8x1xf32>
    %246 = vector.broadcast %245 : vector<8x1xf32> to vector<8x8xf32>
    %247 = arith.subf %243, %246 : vector<8x8xf32>
    %248 = math.exp %247 : vector<8x8xf32>
    %cst_75 = arith.constant dense<0.000000e+00> : vector<8xf32>
    %249 = vector.multi_reduction <add>, %248, %cst_75 [1] : vector<8x8xf32> to vector<8xf32>
    %250 = vector.shape_cast %249 : vector<8xf32> to vector<8x1xf32>
    %251 = vector.broadcast %250 : vector<8x1xf32> to vector<8x8xf32>
    %252 = arith.divf %248, %251 : vector<8x8xf32>
    %cst_76 = arith.constant dense<0.000000e+00> : vector<8x8xf32>
    %253 = tpu.matmul %252, %242, %cst_76 {dimension_numbers = #tpu.dot_dimension_numbers<[1], [0], [0], [1], [0, 0, 1, 1], [], []>} : vector<8x8xf32>, vector<8x8xf32>, vector<8x8xf32> -> vector<8x8xf32>
    %254 = vector.extract_strided_slice %222 {offsets = [0, 16], sizes = [8, 8], strides = [1, 1]} : vector<16x64xf32> to vector<8x8xf32>
    %255 = vector.extract_strided_slice %222 {offsets = [0, 48], sizes = [8, 8], strides = [1, 1]} : vector<16x64xf32> to vector<8x8xf32>
    %256 = vector.extract_strided_slice %225 {offsets = [0, 16], sizes = [8, 8], strides = [1, 1]} : vector<16x32xf32> to vector<8x8xf32>
    %cst_77 = arith.constant dense<0.000000e+00> : vector<8x8xf32>
    %257 = tpu.matmul %254, %255, %cst_77 {dimension_numbers = #tpu.dot_dimension_numbers<[1], [1], [0], [0], [0, 0, 1, 0], [], []>} : vector<8x8xf32>, vector<8x8xf32>, vector<8x8xf32> -> vector<8x8xf32>
    %cst_78 = arith.constant dense<0xFF800000> : vector<8xf32>
    %258 = vector.multi_reduction <maximumf>, %257, %cst_78 [1] : vector<8x8xf32> to vector<8xf32>
    %259 = vector.shape_cast %258 : vector<8xf32> to vector<8x1xf32>
    %260 = vector.broadcast %259 : vector<8x1xf32> to vector<8x8xf32>
    %261 = arith.subf %257, %260 : vector<8x8xf32>
    %262 = math.exp %261 : vector<8x8xf32>
    %cst_79 = arith.constant dense<0.000000e+00> : vector<8xf32>
    %263 = vector.multi_reduction <add>, %262, %cst_79 [1] : vector<8x8xf32> to vector<8xf32>
    %264 = vector.shape_cast %263 : vector<8xf32> to vector<8x1xf32>
    %265 = vector.broadcast %264 : vector<8x1xf32> to vector<8x8xf32>
    %266 = arith.divf %262, %265 : vector<8x8xf32>
    %cst_80 = arith.constant dense<0.000000e+00> : vector<8x8xf32>
    %267 = tpu.matmul %266, %256, %cst_80 {dimension_numbers = #tpu.dot_dimension_numbers<[1], [0], [0], [1], [0, 0, 1, 1], [], []>} : vector<8x8xf32>, vector<8x8xf32>, vector<8x8xf32> -> vector<8x8xf32>
    %268 = vector.extract_strided_slice %222 {offsets = [0, 24], sizes = [8, 8], strides = [1, 1]} : vector<16x64xf32> to vector<8x8xf32>
    %269 = vector.extract_strided_slice %222 {offsets = [0, 56], sizes = [8, 8], strides = [1, 1]} : vector<16x64xf32> to vector<8x8xf32>
    %270 = vector.extract_strided_slice %225 {offsets = [0, 24], sizes = [8, 8], strides = [1, 1]} : vector<16x32xf32> to vector<8x8xf32>
    %cst_81 = arith.constant dense<0.000000e+00> : vector<8x8xf32>
    %271 = tpu.matmul %268, %269, %cst_81 {dimension_numbers = #tpu.dot_dimension_numbers<[1], [1], [0], [0], [0, 0, 1, 0], [], []>} : vector<8x8xf32>, vector<8x8xf32>, vector<8x8xf32> -> vector<8x8xf32>
    %cst_82 = arith.constant dense<0xFF800000> : vector<8xf32>
    %272 = vector.multi_reduction <maximumf>, %271, %cst_82 [1] : vector<8x8xf32> to vector<8xf32>
    %273 = vector.shape_cast %272 : vector<8xf32> to vector<8x1xf32>
    %274 = vector.broadcast %273 : vector<8x1xf32> to vector<8x8xf32>
    %275 = arith.subf %271, %274 : vector<8x8xf32>
    %276 = math.exp %275 : vector<8x8xf32>
    %cst_83 = arith.constant dense<0.000000e+00> : vector<8xf32>
    %277 = vector.multi_reduction <add>, %276, %cst_83 [1] : vector<8x8xf32> to vector<8xf32>
    %278 = vector.shape_cast %277 : vector<8xf32> to vector<8x1xf32>
    %279 = vector.broadcast %278 : vector<8x1xf32> to vector<8x8xf32>
    %280 = arith.divf %276, %279 : vector<8x8xf32>
    %cst_84 = arith.constant dense<0.000000e+00> : vector<8x8xf32>
    %281 = tpu.matmul %280, %270, %cst_84 {dimension_numbers = #tpu.dot_dimension_numbers<[1], [0], [0], [1], [0, 0, 1, 1], [], []>} : vector<8x8xf32>, vector<8x8xf32>, vector<8x8xf32> -> vector<8x8xf32>
    %282 = tpu.concatenate %239, %253, %267, %281 in 1 : vector<8x8xf32>, vector<8x8xf32>, vector<8x8xf32>, vector<8x8xf32> -> vector<8x32xf32>
    %283 = vector.extract_strided_slice %222 {offsets = [8, 0], sizes = [8, 8], strides = [1, 1]} : vector<16x64xf32> to vector<8x8xf32>
    %284 = vector.extract_strided_slice %222 {offsets = [8, 32], sizes = [8, 8], strides = [1, 1]} : vector<16x64xf32> to vector<8x8xf32>
    %285 = vector.extract_strided_slice %225 {offsets = [8, 0], sizes = [8, 8], strides = [1, 1]} : vector<16x32xf32> to vector<8x8xf32>
    %cst_85 = arith.constant dense<0.000000e+00> : vector<8x8xf32>
    %286 = tpu.matmul %283, %284, %cst_85 {dimension_numbers = #tpu.dot_dimension_numbers<[1], [1], [0], [0], [0, 0, 1, 0], [], []>} : vector<8x8xf32>, vector<8x8xf32>, vector<8x8xf32> -> vector<8x8xf32>
    %cst_86 = arith.constant dense<0xFF800000> : vector<8xf32>
    %287 = vector.multi_reduction <maximumf>, %286, %cst_86 [1] : vector<8x8xf32> to vector<8xf32>
    %288 = vector.shape_cast %287 : vector<8xf32> to vector<8x1xf32>
    %289 = vector.broadcast %288 : vector<8x1xf32> to vector<8x8xf32>
    %290 = arith.subf %286, %289 : vector<8x8xf32>
    %291 = math.exp %290 : vector<8x8xf32>
    %cst_87 = arith.constant dense<0.000000e+00> : vector<8xf32>
    %292 = vector.multi_reduction <add>, %291, %cst_87 [1] : vector<8x8xf32> to vector<8xf32>
    %293 = vector.shape_cast %292 : vector<8xf32> to vector<8x1xf32>
    %294 = vector.broadcast %293 : vector<8x1xf32> to vector<8x8xf32>
    %295 = arith.divf %291, %294 : vector<8x8xf32>
    %cst_88 = arith.constant dense<0.000000e+00> : vector<8x8xf32>
    %296 = tpu.matmul %295, %285, %cst_88 {dimension_numbers = #tpu.dot_dimension_numbers<[1], [0], [0], [1], [0, 0, 1, 1], [], []>} : vector<8x8xf32>, vector<8x8xf32>, vector<8x8xf32> -> vector<8x8xf32>
    %297 = vector.extract_strided_slice %222 {offsets = [8, 8], sizes = [8, 8], strides = [1, 1]} : vector<16x64xf32> to vector<8x8xf32>
    %298 = vector.extract_strided_slice %222 {offsets = [8, 40], sizes = [8, 8], strides = [1, 1]} : vector<16x64xf32> to vector<8x8xf32>
    %299 = vector.extract_strided_slice %225 {offsets = [8, 8], sizes = [8, 8], strides = [1, 1]} : vector<16x32xf32> to vector<8x8xf32>
    %cst_89 = arith.constant dense<0.000000e+00> : vector<8x8xf32>
    %300 = tpu.matmul %297, %298, %cst_89 {dimension_numbers = #tpu.dot_dimension_numbers<[1], [1], [0], [0], [0, 0, 1, 0], [], []>} : vector<8x8xf32>, vector<8x8xf32>, vector<8x8xf32> -> vector<8x8xf32>
    %cst_90 = arith.constant dense<0xFF800000> : vector<8xf32>
    %301 = vector.multi_reduction <maximumf>, %300, %cst_90 [1] : vector<8x8xf32> to vector<8xf32>
    %302 = vector.shape_cast %301 : vector<8xf32> to vector<8x1xf32>
    %303 = vector.broadcast %302 : vector<8x1xf32> to vector<8x8xf32>
    %304 = arith.subf %300, %303 : vector<8x8xf32>
    %305 = math.exp %304 : vector<8x8xf32>
    %cst_91 = arith.constant dense<0.000000e+00> : vector<8xf32>
    %306 = vector.multi_reduction <add>, %305, %cst_91 [1] : vector<8x8xf32> to vector<8xf32>
    %307 = vector.shape_cast %306 : vector<8xf32> to vector<8x1xf32>
    %308 = vector.broadcast %307 : vector<8x1xf32> to vector<8x8xf32>
    %309 = arith.divf %305, %308 : vector<8x8xf32>
    %cst_92 = arith.constant dense<0.000000e+00> : vector<8x8xf32>
    %310 = tpu.matmul %309, %299, %cst_92 {dimension_numbers = #tpu.dot_dimension_numbers<[1], [0], [0], [1], [0, 0, 1, 1], [], []>} : vector<8x8xf32>, vector<8x8xf32>, vector<8x8xf32> -> vector<8x8xf32>
    %311 = vector.extract_strided_slice %222 {offsets = [8, 16], sizes = [8, 8], strides = [1, 1]} : vector<16x64xf32> to vector<8x8xf32>
    %312 = vector.extract_strided_slice %222 {offsets = [8, 48], sizes = [8, 8], strides = [1, 1]} : vector<16x64xf32> to vector<8x8xf32>
    %313 = vector.extract_strided_slice %225 {offsets = [8, 16], sizes = [8, 8], strides = [1, 1]} : vector<16x32xf32> to vector<8x8xf32>
    %cst_93 = arith.constant dense<0.000000e+00> : vector<8x8xf32>
    %314 = tpu.matmul %311, %312, %cst_93 {dimension_numbers = #tpu.dot_dimension_numbers<[1], [1], [0], [0], [0, 0, 1, 0], [], []>} : vector<8x8xf32>, vector<8x8xf32>, vector<8x8xf32> -> vector<8x8xf32>
    %cst_94 = arith.constant dense<0xFF800000> : vector<8xf32>
    %315 = vector.multi_reduction <maximumf>, %314, %cst_94 [1] : vector<8x8xf32> to vector<8xf32>
    %316 = vector.shape_cast %315 : vector<8xf32> to vector<8x1xf32>
    %317 = vector.broadcast %316 : vector<8x1xf32> to vector<8x8xf32>
    %318 = arith.subf %314, %317 : vector<8x8xf32>
    %319 = math.exp %318 : vector<8x8xf32>
    %cst_95 = arith.constant dense<0.000000e+00> : vector<8xf32>
    %320 = vector.multi_reduction <add>, %319, %cst_95 [1] : vector<8x8xf32> to vector<8xf32>
    %321 = vector.shape_cast %320 : vector<8xf32> to vector<8x1xf32>
    %322 = vector.broadcast %321 : vector<8x1xf32> to vector<8x8xf32>
    %323 = arith.divf %319, %322 : vector<8x8xf32>
    %cst_96 = arith.constant dense<0.000000e+00> : vector<8x8xf32>
    %324 = tpu.matmul %323, %313, %cst_96 {dimension_numbers = #tpu.dot_dimension_numbers<[1], [0], [0], [1], [0, 0, 1, 1], [], []>} : vector<8x8xf32>, vector<8x8xf32>, vector<8x8xf32> -> vector<8x8xf32>
    %325 = vector.extract_strided_slice %222 {offsets = [8, 24], sizes = [8, 8], strides = [1, 1]} : vector<16x64xf32> to vector<8x8xf32>
    %326 = vector.extract_strided_slice %222 {offsets = [8, 56], sizes = [8, 8], strides = [1, 1]} : vector<16x64xf32> to vector<8x8xf32>
    %327 = vector.extract_strided_slice %225 {offsets = [8, 24], sizes = [8, 8], strides = [1, 1]} : vector<16x32xf32> to vector<8x8xf32>
    %cst_97 = arith.constant dense<0.000000e+00> : vector<8x8xf32>
    %328 = tpu.matmul %325, %326, %cst_97 {dimension_numbers = #tpu.dot_dimension_numbers<[1], [1], [0], [0], [0, 0, 1, 0], [], []>} : vector<8x8xf32>, vector<8x8xf32>, vector<8x8xf32> -> vector<8x8xf32>
    %cst_98 = arith.constant dense<0xFF800000> : vector<8xf32>
    %329 = vector.multi_reduction <maximumf>, %328, %cst_98 [1] : vector<8x8xf32> to vector<8xf32>
    %330 = vector.shape_cast %329 : vector<8xf32> to vector<8x1xf32>
    %331 = vector.broadcast %330 : vector<8x1xf32> to vector<8x8xf32>
    %332 = arith.subf %328, %331 : vector<8x8xf32>
    %333 = math.exp %332 : vector<8x8xf32>
    %cst_99 = arith.constant dense<0.000000e+00> : vector<8xf32>
    %334 = vector.multi_reduction <add>, %333, %cst_99 [1] : vector<8x8xf32> to vector<8xf32>
    %335 = vector.shape_cast %334 : vector<8xf32> to vector<8x1xf32>
    %336 = vector.broadcast %335 : vector<8x1xf32> to vector<8x8xf32>
    %337 = arith.divf %333, %336 : vector<8x8xf32>
    %cst_100 = arith.constant dense<0.000000e+00> : vector<8x8xf32>
    %338 = tpu.matmul %337, %327, %cst_100 {dimension_numbers = #tpu.dot_dimension_numbers<[1], [0], [0], [1], [0, 0, 1, 1], [], []>} : vector<8x8xf32>, vector<8x8xf32>, vector<8x8xf32> -> vector<8x8xf32>
    %339 = tpu.concatenate %296, %310, %324, %338 in 1 : vector<8x8xf32>, vector<8x8xf32>, vector<8x8xf32>, vector<8x8xf32> -> vector<8x32xf32>
    %340 = tpu.concatenate %282, %339 in 0 : vector<8x32xf32>, vector<8x32xf32> -> vector<16x32xf32>
    %cst_101 = arith.constant dense<0.000000e+00> : vector<16x32xf32>
    %341 = tpu.matmul %340, %204, %cst_101 {dimension_numbers = #tpu.dot_dimension_numbers<[1], [0], [0], [1], [0, 0, 1, 1], [], []>} : vector<16x32xf32>, vector<32x32xf32>, vector<16x32xf32> -> vector<16x32xf32>
    %342 = vector.broadcast %212 : vector<1x32xf32> to vector<16x32xf32>
    %343 = arith.addf %341, %342 : vector<16x32xf32>
    %344 = arith.addf %199, %343 : vector<16x32xf32>
    %cst_102 = arith.constant dense<0.000000e+00> : vector<16xf32>
    %345 = vector.multi_reduction <add>, %344, %cst_102 [1] : vector<16x32xf32> to vector<16xf32>
    %346 = vector.shape_cast %345 : vector<16xf32> to vector<16x1xf32>
    %cst_103 = arith.constant 3.200000e+01 : f32
    %347 = vector.broadcast %cst_103 : f32 to vector<16x1xf32>
    %348 = arith.divf %346, %347 : vector<16x1xf32>
    %349 = vector.broadcast %348 : vector<16x1xf32> to vector<16x32xf32>
    %350 = arith.subf %344, %349 : vector<16x32xf32>
    %351 = arith.mulf %350, %350 : vector<16x32xf32>
    %cst_104 = arith.constant dense<0.000000e+00> : vector<16xf32>
    %352 = vector.multi_reduction <add>, %351, %cst_104 [1] : vector<16x32xf32> to vector<16xf32>
    %353 = vector.shape_cast %352 : vector<16xf32> to vector<16x1xf32>
    %cst_105 = arith.constant 3.200000e+01 : f32
    %354 = vector.broadcast %cst_105 : f32 to vector<16x1xf32>
    %355 = arith.divf %353, %354 : vector<16x1xf32>
    %356 = vector.broadcast %348 : vector<16x1xf32> to vector<16x32xf32>
    %357 = arith.subf %344, %356 : vector<16x32xf32>
    %cst_106 = arith.constant 9.99999974E-6 : f32
    %358 = vector.broadcast %cst_106 : f32 to vector<16x1xf32>
    %359 = arith.addf %355, %358 : vector<16x1xf32>
    %360 = math.rsqrt %359 : vector<16x1xf32>
    %361 = vector.broadcast %360 : vector<16x1xf32> to vector<16x32xf32>
    %362 = arith.mulf %357, %361 : vector<16x32xf32>
    %363 = vector.broadcast %213 : vector<1x32xf32> to vector<16x32xf32>
    %364 = arith.mulf %362, %363 : vector<16x32xf32>
    %365 = vector.broadcast %214 : vector<1x32xf32> to vector<16x32xf32>
    %366 = arith.addf %364, %365 : vector<16x32xf32>
    %cst_107 = arith.constant dense<0.000000e+00> : vector<16x64xf32>
    %367 = tpu.matmul %366, %205, %cst_107 {dimension_numbers = #tpu.dot_dimension_numbers<[1], [0], [0], [1], [0, 0, 1, 1], [], []>} : vector<16x32xf32>, vector<32x64xf32>, vector<16x64xf32> -> vector<16x64xf32>
    %368 = vector.broadcast %215 : vector<1x64xf32> to vector<16x64xf32>
    %369 = arith.addf %367, %368 : vector<16x64xf32>
    %cst_108 = arith.constant 0.000000e+00 : f32
    %370 = vector.broadcast %cst_108 : f32 to vector<16x64xf32>
    %371 = arith.maximumf %369, %370 : vector<16x64xf32>
    %cst_109 = arith.constant dense<0.000000e+00> : vector<16x32xf32>
    %372 = tpu.matmul %371, %207, %cst_109 {dimension_numbers = #tpu.dot_dimension_numbers<[1], [0], [0], [1], [0, 0, 1, 1], [], []>} : vector<16x64xf32>, vector<64x32xf32>, vector<16x32xf32> -> vector<16x32xf32>
    %373 = vector.broadcast %216 : vector<1x32xf32> to vector<16x32xf32>
    %374 = arith.addf %372, %373 : vector<16x32xf32>
    %375 = arith.addf %366, %374 : vector<16x32xf32>
    %cst_110 = arith.constant dense<0.000000e+00> : vector<16xf32>
    %376 = vector.multi_reduction <add>, %375, %cst_110 [1] : vector<16x32xf32> to vector<16xf32>
    %377 = vector.shape_cast %376 : vector<16xf32> to vector<16x1xf32>
    %cst_111 = arith.constant 3.200000e+01 : f32
    %378 = vector.broadcast %cst_111 : f32 to vector<16x1xf32>
    %379 = arith.divf %377, %378 : vector<16x1xf32>
    %380 = vector.broadcast %379 : vector<16x1xf32> to vector<16x32xf32>
    %381 = arith.subf %375, %380 : vector<16x32xf32>
    %382 = arith.mulf %381, %381 : vector<16x32xf32>
    %cst_112 = arith.constant dense<0.000000e+00> : vector<16xf32>
    %383 = vector.multi_reduction <add>, %382, %cst_112 [1] : vector<16x32xf32> to vector<16xf32>
    %384 = vector.shape_cast %383 : vector<16xf32> to vector<16x1xf32>
    %cst_113 = arith.constant 3.200000e+01 : f32
    %385 = vector.broadcast %cst_113 : f32 to vector<16x1xf32>
    %386 = arith.divf %384, %385 : vector<16x1xf32>
    %387 = vector.broadcast %379 : vector<16x1xf32> to vector<16x32xf32>
    %388 = arith.subf %375, %387 : vector<16x32xf32>
    %cst_114 = arith.constant 9.99999974E-6 : f32
    %389 = vector.broadcast %cst_114 : f32 to vector<16x1xf32>
    %390 = arith.addf %386, %389 : vector<16x1xf32>
    %391 = math.rsqrt %390 : vector<16x1xf32>
    %392 = vector.broadcast %391 : vector<16x1xf32> to vector<16x32xf32>
    %393 = arith.mulf %388, %392 : vector<16x32xf32>
    %394 = vector.broadcast %217 : vector<1x32xf32> to vector<16x32xf32>
    %395 = arith.mulf %393, %394 : vector<16x32xf32>
    %396 = vector.broadcast %218 : vector<1x32xf32> to vector<16x32xf32>
    %397 = arith.addf %395, %396 : vector<16x32xf32>
    %c0_115 = arith.constant 0 : index
    %c0_116 = arith.constant 0 : index
    %398 = vector.load %arg5[%c0_115, %c0_116] : memref<16x32xf32, #tpu.memory_space<vmem>>, vector<16x32xf32>
    tpu.vector_store %arg5[%c0_115, %c0_116], %397 {strides = array<i32>} : memref<16x32xf32, #tpu.memory_space<vmem>>, vector<16x32xf32>,
    return
  }
}

</mosaic_0001>

<bundles_post_ra>
// kernel: tpu_custom_call.1
= control target key start
LH: loop header
LB: loop body
LE: loop exit
PB: predicated region body
PF: predicated region fallthrough
CT: control target
= control target key end

     0   :  { %vm49_vm0 = vcmask 261120   ;;  %s5235_s0 = inlined_call_operand.vmem [shape: f32[16,32], index: 0, kind: input, shape index: {}]   ;;  %s5236_s1 = inlined_call_operand.vmem [shape: f32[16,32], index: 1, kind: input, shape index: {}]   ;;  %s5237_s2 = inlined_call_operand.vmem [shape: f32[2,32,192], index: 2, kind: input, shape index: {}]   ;;  %s5238_s3 = inlined_call_operand.vmem [shape: f32[2,64,32], index: 3, kind: input, shape index: {}]   ;;  %s5239_s4 = inlined_call_operand.vmem [shape: f32[2,9,64], index: 4, kind: input, shape index: {}]   ;;  %s5240_s5 = inlined_call_operand.hbm [shape: f32[16,32], index: 5, kind: output, shape index: {}]  }
   0x1   :  { %v25_v0 = vld [vmem:[%s5237_s2] sm:$0xff]  ;;  %v27_v1 = vld [vmem:[%s5237_s2 + $0x10] sm:$0xff] }
   0x2   :  { %v29_v2 = vld [vmem:[%s5237_s2 + $0x20] sm:$0xff]  ;;  %v4356_v3 = vpack.c.bf16 %v27_v1, %v25_v0  ;;  %v31_v4 = vld [vmem:[%s5237_s2 + $0x30] sm:$0xff] }
   0x3   :  { %v4673_v5 = vld [vmem:[%s5235_s0] sm:$0xff]  ;;  %v4360_v7 = vpack.c.bf16 %v31_v4, %v29_v2 }
   0x4   :  { %v4678_v6 = vld [vmem:[%s5236_s1] sm:$0xff]  ;;  %4357 = vmatprep.subr.bf16.mxu1 %v4356_v3 }
   0x5   :  { %v43_v8 = vadd.f32 %v4678_v6, %v4673_v5 }
   0x6   :  { %10 = vsyncpa [#allocation3], 0  ;;  %4359 = vmatpush3.bf16.msra.mxu1 %v4356_v3  ;;  %v4686_v9 = vld [vmem:[%s5235_s0 + $0x8] sm:$0xff]  ;;  %v4612_v12 = vmov 0.0   ;;  %v45_v13 = vlaneseq  ;;  %vm4613_vm1 = vmmov 0   ;;  %v4707_v16 = vld [vmem:[%s5239_s4] sm:$0xff]  ;;  %v4726_v22 = vpack.i.bf16 %v27_v1, %v25_v0 }
   0x7   :  { %4078 = vmatprep.mubr.msk.f32.mxu1 %vm49_vm0, %v43_v8  ;;  %v4691_v10 = vld [vmem:[%s5236_s1 + $0x8] sm:$0xff]  ;;  %4361 = vmatprep.subr.bf16.mxu1 %v4360_v7  ;;  %s4614_s9 = smov 120   ;;  %s4615_s10 = smov 96   ;;  %v4728_v23 = vpack.i.bf16 %v31_v4, %v29_v2  ;;  %vm235_vm2 = vcmask 64512   ;;  %vm903_vm3 = vcmask 130048   ;;  %vm905_vm4 = vcmask 195584  }
   0x8   :  { %v44_v11 = vadd.f32 %v4691_v10, %v4686_v9  ;;  %4092 = vmatprep.subr.mxu0 %v4612_v12  ;;  %v4699_v14 = vshrl.u32 %v45_v13, 7  ;;  %4094 = vmatprep.mubr.msk.f32.mxu0 %vm4613_vm1, %v4612_v12  ;;  %s4616_s11 = smov 80   ;;  %s4617_s12 = smov 88   ;;  %vm1808_vm5 = vcmask 523264  }
   0x9   :  { %s4618_s13 = smov 72   ;;  %s4619_s14 = smov 112  }
   0xa   :  { %4363 = vmatpush3.bf16.msra.mxu1 %v4360_v7  ;;  %v47_v15 = vsub.s32 0, %v4699_v14  ;;  %s4620_s15 = smov 104   ;;  %s4621_s16 = smov 64   ;;  %v133_v8 = vsub.s32 1, %v4699_v14 }
   0xb   :  { %s4622_s17 = smov 32   ;;  %s4623_s18 = smov 8  }
   0xc   :  { %v48_v17 = vrot.slane %v4707_v16, %v47_v15  ;;  %s4624_s19 = smov 16   ;;  %s4625_s20 = smov 24  }
   0xd   :  { %4079 = vmatmul.mubr.msk.f32.vlgmr.msra.gmra.mrb[0].mxu1 %vm49_vm0, %v44_v11  ;;  %v134_v11 = vrot.slane %v4707_v16, %v133_v8  ;;  %s4626_s25 = smov [#allocation2]  }
   0xe   :  { %4089 = vmatprep.mubr.msk.f32.mxu1 %vm49_vm0, %v4673_v5  ;;  %s3839_s26 = sshll.u32 %s4626_s25, 4  ;;  %s3840_s26 = int_to_ptr.vmem [resolvable:$true] %s3839_s26 }
   0xf   :  { %p4593_p1 = scmp.lt.s32.totalorder %s3840_s26, %s3840_s26 }
  0xe0   :  { %v4080_v18 = vpop.f32.mrb[0].mxu1 }
  0xe1   :  { %v122_v19 = vpop.f32.mrb[1].mxu1  ;;  %v128_v21 = vadd.f32 %v4080_v18, %v48_v17 }
  0xe2   :  { %v123_v20 = vadd.f32 %v122_v19, %v48_v17 }
  0xe4   :  { %394 = vrot.lane.b32.xlu1 %v123_v20, %s4614_s9  ;;  %233 = vrot.lane.b32.xlu0 %v123_v20, %s4615_s10 }
  0xe8   :  { %562 = vrot.lane.b32.xlu1 %v123_v20, %s4616_s11  ;;  %396 = vrot.lane.b32.xlu0 %v123_v20, %s4617_s12 }
  0xec   :  { %727 = vrot.lane.b32.xlu1 %v123_v20, %s4618_s13  ;;  %560 = vrot.lane.b32.xlu0 %v123_v20, %s4619_s14 }
  0xf0   :  { %908 = vrot.lane.b32.xlu1 %v128_v21, %s4615_s10  ;;  %725 = vrot.lane.b32.xlu0 %v123_v20, %s4620_s15 }
  0xf4   :  { %1068 = vrot.lane.b32.xlu1 %v128_v21, %s4614_s9  ;;  %1070 = vrot.lane.b32.xlu0 %v128_v21, %s4617_s12 }
  0xf8   :  { %1234 = vrot.lane.b32.xlu1 %v128_v21, %s4619_s14  ;;  %1236 = vrot.lane.b32.xlu0 %v128_v21, %s4616_s11 }
  0xfc   :  { %1399 = vrot.lane.b32.xlu1 %v128_v21, %s4620_s15  ;;  %1401 = vrot.lane.b32.xlu0 %v128_v21, %s4618_s13 }
 0x100   :  { %4469 = vrot.lane.b32.xlu0 %v4726_v22, %s4621_s16  ;;  %4474 = vrot.lane.b32.xlu1 %v4728_v23, %s4621_s16 }
 0x156   :  { %v395_v24 = vpop.permute.xlu1 %394  ;;  %v234_v25 = vpop.permute.xlu0 %233 }
 0x157   :  { %4093 = vmatpush3.xpose.msk.msra.mxu0 %vm235_vm2, %v234_v25 }
 0x158   :  { %4102 = vmatprep.subr.mxu0 %v4612_v12 }
 0x15a   :  { %v563_v26 = vpop.permute.xlu1 %562  ;;  %4095 = vmatmul.mubr.msk.f32.vlgmr.msra.gmra.mrb[0].mxu0 %vm235_vm2, %v123_v20  ;;  %v397_v27 = vpop.permute.xlu0 %396 }
 0x15b   :  { %4103 = vmatpush3.xpose.msk.msra.mxu0 %vm235_vm2, %v397_v27  ;;  %4104 = vmatprep.mubr.msk.f32.mxu0 %vm4613_vm1, %v4612_v12 }
 0x15c   :  { %4112 = vmatprep.subr.mxu0 %v4612_v12 }
 0x15e   :  { %v728_v28 = vpop.permute.xlu1 %727  ;;  %4105 = vmatmul.mubr.msk.f32.vlgmr.msra.gmra.mrb[2].mxu0 %vm235_vm2, %v395_v24  ;;  %v561_v29 = vpop.permute.xlu0 %560 }
 0x15f   :  { %4113 = vmatpush3.xpose.msk.msra.mxu0 %vm235_vm2, %v563_v26  ;;  %4114 = vmatprep.mubr.msk.f32.mxu0 %vm4613_vm1, %v4612_v12 }
 0x160   :  { %4122 = vmatprep.subr.mxu0 %v4612_v12 }
 0x162   :  { %v909_v30 = vpop.permute.xlu1 %908  ;;  %4115 = vmatmul.mubr.msk.f32.vlgmr.msra.gmra.mrb[4].mxu0 %vm235_vm2, %v561_v29  ;;  %v726_v31 = vpop.permute.xlu0 %725 }
 0x163   :  { %4123 = vmatpush3.xpose.msk.msra.mxu0 %vm235_vm2, %v728_v28  ;;  %4124 = vmatprep.mubr.msk.f32.mxu0 %vm4613_vm1, %v4612_v12 }
 0x164   :  { %4132 = vmatprep.subr.mxu0 %v4612_v12 }
 0x166   :  { %v1069_v32 = vpop.permute.xlu1 %1068  ;;  %4125 = vmatmul.mubr.msk.f32.vlgmr.msra.gmra.mrb[6].mxu0 %vm235_vm2, %v726_v31  ;;  %v1071_v33 = vpop.permute.xlu0 %1070 }
 0x167   :  { %4133 = vmatpush3.xpose.msk.msra.mxu0 %vm235_vm2, %v909_v30  ;;  %4134 = vmatprep.mubr.msk.f32.mxu0 %vm4613_vm1, %v4612_v12 }
 0x168   :  { %4142 = vmatprep.subr.mxu0 %v4612_v12 }
 0x16a   :  { %v1235_v34 = vpop.permute.xlu1 %1234  ;;  %4135 = vmatmul.mubr.msk.f32.vlgmr.msra.gmra.mrb[8].mxu0 %vm235_vm2, %v128_v21  ;;  %v1237_v35 = vpop.permute.xlu0 %1236 }
 0x16b   :  { %4143 = vmatpush3.xpose.msk.msra.mxu0 %vm235_vm2, %v1071_v33  ;;  %4144 = vmatprep.mubr.msk.f32.mxu0 %vm4613_vm1, %v4612_v12 }
 0x16c   :  { %4152 = vmatprep.subr.mxu0 %v4612_v12 }
 0x16e   :  { %v1400_v36 = vpop.permute.xlu1 %1399  ;;  %4145 = vmatmul.mubr.msk.f32.vlgmr.msra.gmra.mrb[10].mxu0 %vm235_vm2, %v1069_v32  ;;  %v1402_v37 = vpop.permute.xlu0 %1401 }
 0x16f   :  { %4153 = vmatpush3.xpose.msk.msra.mxu0 %vm235_vm2, %v1237_v35  ;;  %4154 = vmatprep.mubr.msk.f32.mxu0 %vm4613_vm1, %v4612_v12 }
 0x170   :  { %4162 = vmatprep.subr.mxu0 %v4612_v12 }
 0x172   :  { %4155 = vmatmul.mubr.msk.f32.vlgmr.msra.gmra.mrb[12].mxu0 %vm235_vm2, %v1235_v34  ;;  %v4470_v38 = vpop.permute.xlu0 %4469  ;;  %v4475_v39 = vpop.permute.xlu1 %4474 }
 0x173   :  { %4163 = vmatpush3.xpose.msk.msra.mxu0 %vm235_vm2, %v1402_v37  ;;  %4164 = vmatprep.mubr.msk.f32.mxu0 %vm4613_vm1, %v4612_v12  ;;  %v4472_v40 = vunpack.i.h.bf16 %v4470_v38  ;;  %v4471_v41 = vunpack.i.l.bf16 %v4470_v38  ;;  %v4477_v42 = vunpack.i.h.bf16 %v4475_v39  ;;  %v4476_v43 = vunpack.i.l.bf16 %v4475_v39 }
 0x175   :  { %v4364_v44 = vpack.c.bf16 %v4472_v40, %v4471_v41  ;;  %v4368_v45 = vpack.c.bf16 %v4477_v42, %v4476_v43 }
 0x176   :  { %4165 = vmatmul.mubr.msk.f32.vlgmr.msra.gmra.mrb[14].mxu0 %vm235_vm2, %v1400_v36 }
 0x177   :  { %4365 = vmatprep.subr.bf16.mxu1 %v4364_v44 }
 0x178   :  { %4367 = vmatpush3.bf16.msra.mxu1 %v4364_v44 }
 0x179   :  { %4369 = vmatprep.subr.bf16.mxu1 %v4368_v45 }
 0x17c   :  { %4371 = vmatpush3.bf16.msra.mxu1 %v4368_v45 }
 0x17d   :  { %4097 = vmatprep.subr.mxu1 %v4612_v12 }
 0x17f   :  { %4090 = vmatmul.mubr.msk.f32.vlgmr.msra.gmra.mrb[2].mxu1 %vm49_vm0, %v4686_v9 }
 0x180   :  { %4099 = vmatprep.mubr.msk.f32.mxu1 %vm4613_vm1, %v4612_v12 }
 0x22d   :  { %v306_v46 = vpop.f32.mrb[0].mxu0 }
 0x22e   :  { %v4096_v47 = vpop.f32.mrb[1].mxu0  ;;  %v310_v48 = vsel %vm235_vm2, %v306_v46, -inf }
 0x22f   :  { %311 = vmax.xlane.f32.xlu0 %v310_v48 }
 0x231   :  { %v468_v49 = vpop.f32.mrb[2].mxu0 }
 0x232   :  { %v4106_v50 = vpop.f32.mrb[3].mxu0  ;;  %v472_v51 = vsel %vm235_vm2, %v468_v49, -inf }
 0x233   :  { %473 = vmax.xlane.f32.xlu1 %v472_v51 }
 0x235   :  { %v634_v52 = vpop.f32.mrb[4].mxu0 }
 0x236   :  { %v4116_v53 = vpop.f32.mrb[5].mxu0  ;;  %v638_v54 = vsel %vm235_vm2, %v634_v52, -inf }
 0x237   :  { %639 = vmax.xlane.f32.xlu0 %v638_v54 }
 0x239   :  { %v799_v55 = vpop.f32.mrb[6].mxu0 }
 0x23a   :  { %v4126_v56 = vpop.f32.mrb[7].mxu0  ;;  %v803_v57 = vsel %vm235_vm2, %v799_v55, -inf }
 0x23b   :  { %804 = vmax.xlane.f32.xlu0 %v803_v57 }
 0x23d   :  { %v4780_v58 = vpop.f32.mrb[8].mxu0 }
 0x23e   :  { %v4136_v59 = vpop.f32.mrb[9].mxu0  ;;  %v984_v60 = vsel %vm235_vm2, %v4780_v58, -inf }
 0x23f   :  { %985 = vmax.xlane.f32.xlu1 %v984_v60 }
 0x241   :  { %v1142_v61 = vpop.f32.mrb[10].mxu0 }
 0x242   :  { %v4146_v62 = vpop.f32.mrb[11].mxu0  ;;  %v1146_v63 = vsel %vm235_vm2, %v1142_v61, -inf }
 0x243   :  { %1147 = vmax.xlane.f32.xlu0 %v1146_v63 }
 0x245   :  { %v4785_v0 = vpop.f32.mrb[12].mxu0 }
 0x246   :  { %v4156_v1 = vpop.f32.mrb[13].mxu0  ;;  %v1312_v2 = vsel %vm235_vm2, %v4785_v0, -inf }
 0x247   :  { %1313 = vmax.xlane.f32.xlu1 %v1312_v2 }
 0x249   :  { %v1473_v3 = vpop.f32.mrb[14].mxu0 }
 0x24a   :  { %v4166_v4 = vpop.f32.mrb[15].mxu0  ;;  %v1477_v7 = vsel %vm235_vm2, %v1473_v3, -inf }
 0x24b   :  { %1478 = vmax.xlane.f32.xlu0 %v1477_v7 }
 0x252   :  { %v4091_v13 = vpop.f32.mrb[2].mxu1 }
 0x253   :  { %v4794_v17 = vadd.f32 %v4091_v13, %v134_v11  ;;  %v223_v18 = vpop.f32.mrb[3].mxu1 }
 0x254   :  { %v224_v19 = vadd.f32 %v223_v18, %v134_v11 }
 0x256   :  { %4098 = vmatpush3.msra.mxu1 %v224_v19 }
 0x257   :  { %4107 = vmatprep.subr.mxu1 %v4612_v12 }
 0x258   :  { %484 = vrot.lane.b32.xlu1 %v224_v19, %s4614_s9 }
 0x2bc   :  { %v312_v20 = vpop.xlane.xlu0 %311 }
 0x2bd   :  { %v313_v21 = vsub.f32 %v306_v46, %v312_v20 }
 0x2bf   :  { %v314_v24 = vmul.f32 1.442695, %v313_v21 }
 0x2c0   :  { %v474_v25 = vpop.xlane.xlu1 %473 }
 0x2c1   :  { %4508 = vpow2.f32 %v314_v24  ;;  %v475_v26 = vsub.f32 %v468_v49, %v474_v25 }
 0x2c3   :  { %v476_v27 = vmul.f32 1.442695, %v475_v26 }
 0x2c4   :  { %v640_v32 = vpop.xlane.xlu0 %639 }
 0x2c5   :  { %4510 = vpow2.f32 %v476_v27  ;;  %v641_v33 = vsub.f32 %v634_v52, %v640_v32 }
 0x2c7   :  { %v642_v35 = vmul.f32 1.442695, %v641_v33 }
 0x2c8   :  { %v805_v34 = vpop.xlane.xlu0 %804 }
 0x2c9   :  { %v806_v36 = vsub.f32 %v799_v55, %v805_v34  ;;  %4512 = vpow2.f32 %v642_v35 }
 0x2cb   :  { %v4509_v28 = vpop.eup %4508  ;;  %v807_v38 = vmul.f32 1.442695, %v806_v36 }
 0x2cc   :  { %v316_v29 = vsel %vm235_vm2, %v4509_v28, 0.0  ;;  %v986_v52 = vpop.xlane.xlu1 %985 }
 0x2cd   :  { %317 = vadd.xlane.f32.xlu1 %v316_v29  ;;  %4514 = vpow2.f32 %v807_v38  ;;  %v987_v53 = vsub.f32 %v4780_v58, %v986_v52 }
 0x2cf   :  { %v4511_v30 = vpop.eup %4510  ;;  %v988_v55 = vmul.f32 1.442695, %v987_v53 }
 0x2d0   :  { %v478_v31 = vsel %vm235_vm2, %v4511_v30, 0.0  ;;  %v1148_v37 = vpop.xlane.xlu0 %1147 }
 0x2d1   :  { %479 = vadd.xlane.f32.xlu0 %v478_v31  ;;  %v1149_v39 = vsub.f32 %v1142_v61, %v1148_v37 }
 0x2d3   :  { %v1150_v41 = vmul.f32 1.442695, %v1149_v39  ;;  %v4513_v44 = vpop.eup %4512 }
 0x2d4   :  { %v644_v45 = vsel %vm235_vm2, %v4513_v44, 0.0  ;;  %v1314_v54 = vpop.xlane.xlu1 %1313 }
 0x2d5   :  { %4516 = vpow2.f32 %v1150_v41  ;;  %v1315_v56 = vsub.f32 %v4785_v0, %v1314_v54 }
 0x2d7   :  { %v4515_v46 = vpop.eup %4514  ;;  %v1316_v57 = vmul.f32 1.442695, %v1315_v56 }
 0x2d8   :  { %v1479_v40 = vpop.xlane.xlu0 %1478  ;;  %v809_v47 = vsel %vm235_vm2, %v4515_v46, 0.0  ;;  %v485_v58 = vpop.permute.xlu1 %484 }
 0x2d9   :  { %v1480_v42 = vsub.f32 %v1473_v3, %v1479_v40 }
 0x2db   :  { %v1481_v43 = vmul.f32 1.442695, %v1480_v42 }
 0x2dd   :  { %4518 = vpow2.f32 %v1481_v43 }
 0x2de   :  { %814 = vrot.lane.b32.xlu1 %v224_v19, %s4620_s15  ;;  %4520 = vpow2.f32 %v988_v55 }
 0x2df   :  { %v4804_v48 = vpop.eup %4516  ;;  %4522 = vpow2.f32 %v1316_v57 }
 0x2e0   :  { %v1152_v49 = vsel %vm235_vm2, %v4804_v48, 0.0 }
 0x2e7   :  { %649 = vrot.lane.b32.xlu0 %v224_v19, %s4619_s14  ;;  %v4808_v50 = vpop.eup %4518 }
 0x2e8   :  { %v1483_v51 = vsel %vm235_vm2, %v4808_v50, 0.0  ;;  %v4521_v59 = vpop.eup %4520 }
 0x2e9   :  { %v990_v60 = vsel %vm235_vm2, %v4521_v59, 0.0  ;;  %v4819_v61 = vpop.eup %4522 }
 0x2ea   :  { %v1318_v62 = vsel %vm235_vm2, %v4819_v61, 0.0 }
 0x302   :  { %645 = vadd.xlane.f32.xlu1 %v644_v45 }
 0x306   :  { %810 = vadd.xlane.f32.xlu0 %v809_v47 }
 0x30a   :  { %1153 = vadd.xlane.f32.xlu0 %v1152_v49 }
 0x30e   :  { %1484 = vadd.xlane.f32.xlu0 %v1483_v51 }
 0x313   :  { %1158 = vrot.lane.b32.xlu1 %v4794_v17, %s4614_s9 }
 0x324   :  { %1323 = vrot.lane.b32.xlu0 %v4794_v17, %s4619_s14 }
 0x328   :  { %4479 = vrot.lane.b32.xlu0 %v4726_v22, %s4622_s17 }
 0x337   :  { %991 = vadd.xlane.f32.xlu1 %v990_v60 }
 0x33b   :  { %1319 = vadd.xlane.f32.xlu1 %v1318_v62 }
 0x34c   :  { %1488 = vrot.lane.b32.xlu1 %v4794_v17, %s4620_s15 }
 0x350   :  { %4484 = vrot.lane.b32.xlu1 %v4728_v23, %s4622_s17 }
 0x35a   :  { %v318_v63 = vpop.xlane.xlu1 %317 }
 0x35b   :  { %4524 = vrcp.f32 %v318_v63 }
 0x35e   :  { %v480_v0 = vpop.xlane.xlu0 %479  ;;  %v815_v11 = vpop.permute.xlu1 %814 }
 0x35f   :  { %4526 = vrcp.f32 %v480_v0 }
 0x362   :  { %v650_v7 = vpop.permute.xlu0 %649 }
 0x365   :  { %v4525_v1 = vpop.eup %4524 }
 0x366   :  { %v320_v2 = vmul.f32 %v4525_v1, %v4509_v28 }
 0x368   :  { %4100 = vmatmul.mubr.msk.f32.vlgmr.msra.gmra.mrb[4].mxu1 %vm235_vm2, %v320_v2 }
 0x369   :  { %v4527_v3 = vpop.eup %4526  ;;  %4108 = vmatpush3.msra.mxu1 %v485_v58  ;;  %4109 = vmatprep.mubr.msk.f32.mxu1 %vm4613_vm1, %v4612_v12 }
 0x36a   :  { %v482_v4 = vmul.f32 %v4527_v3, %v4511_v30  ;;  %4117 = vmatprep.subr.mxu1 %v4612_v12 }
 0x36c   :  { %4110 = vmatmul.mubr.msk.f32.vlgmr.msra.gmra.mrb[6].mxu1 %vm235_vm2, %v482_v4 }
 0x36d   :  { %4118 = vmatpush3.msra.mxu1 %v650_v7  ;;  %4119 = vmatprep.mubr.msk.f32.mxu1 %vm4613_vm1, %v4612_v12 }
 0x36e   :  { %4127 = vmatprep.subr.mxu1 %v4612_v12 }
 0x38f   :  { %v646_v13 = vpop.xlane.xlu1 %645 }
 0x390   :  { %4528 = vrcp.f32 %v646_v13 }
 0x393   :  { %v811_v18 = vpop.xlane.xlu0 %810  ;;  %v1159_v25 = vpop.permute.xlu1 %1158 }
 0x394   :  { %4530 = vrcp.f32 %v811_v18 }
 0x397   :  { %v1154_v26 = vpop.xlane.xlu0 %1153 }
 0x39a   :  { %v4529_v19 = vpop.eup %4528 }
 0x39b   :  { %v648_v20 = vmul.f32 %v4529_v19, %v4513_v44  ;;  %v1581_v19 = vsub.s32 2, %v4699_v14 }
 0x39d   :  { %4120 = vmatmul.mubr.msk.f32.vlgmr.msra.gmra.mrb[8].mxu1 %vm235_vm2, %v648_v20  ;;  %v1582_v20 = vrot.slane %v4707_v16, %v1581_v19 }
 0x39e   :  { %v4531_v21 = vpop.eup %4530  ;;  %4128 = vmatpush3.msra.mxu1 %v815_v11  ;;  %4129 = vmatprep.mubr.msk.f32.mxu1 %vm4613_vm1, %v4612_v12 }
 0x39f   :  { %v813_v24 = vmul.f32 %v4531_v21, %v4515_v46  ;;  %4137 = vmatprep.subr.mxu1 %v4612_v12 }
 0x3a1   :  { %4130 = vmatmul.mubr.msk.f32.vlgmr.msra.gmra.mrb[10].mxu1 %vm235_vm2, %v813_v24 }
 0x3a2   :  { %4138 = vmatpush3.msra.mxu1 %v4794_v17  ;;  %4139 = vmatprep.mubr.msk.f32.mxu1 %vm4613_vm1, %v4612_v12  ;;  %v1485_v17 = vpop.xlane.xlu0 %1484 }
 0x3a3   :  { %4147 = vmatprep.subr.mxu1 %v4612_v12 }
 0x3a6   :  { %v1324_v32 = vpop.permute.xlu0 %1323 }
 0x3aa   :  { %v4480_v37 = vpop.permute.xlu0 %4479 }
 0x3ab   :  { %v4482_v38 = vunpack.i.h.bf16 %v4480_v37  ;;  %v4481_v39 = vunpack.i.l.bf16 %v4480_v37  ;;  %v28_v37 = vld [vmem:[%s5237_s2 + $0x18] sm:$0xff] }
 0x3ad   :  { %v4372_v40 = vpack.c.bf16 %v4482_v38, %v4481_v39  ;;  %v30_v39 = vld [vmem:[%s5237_s2 + $0x28] sm:$0xff] }
 0x3af   :  { %4373 = vmatprep.subr.bf16.mxu0 %v4372_v40 }
 0x3b0   :  { %4375 = vmatpush3.bf16.msra.mxu0 %v4372_v40  ;;  %v32_v40 = vld [vmem:[%s5237_s2 + $0x38] sm:$0xff] }
 0x3c4   :  { %v992_v27 = vpop.xlane.xlu1 %991 }
 0x3c5   :  { %4532 = vrcp.f32 %v992_v27 }
 0x3c6   :  { %4534 = vrcp.f32 %v1154_v26 }
 0x3c8   :  { %v1320_v28 = vpop.xlane.xlu1 %1319 }
 0x3c9   :  { %4536 = vrcp.f32 %v1320_v28 }
 0x3ca   :  { %4538 = vrcp.f32 %v1485_v17 }
 0x3cc   :  { %v1489_v35 = vpop.permute.xlu1 %1488 }
 0x3cf   :  { %v4533_v29 = vpop.eup %4532 }
 0x3d0   :  { %v994_v30 = vmul.f32 %v4533_v29, %v4521_v59  ;;  %v4535_v31 = vpop.eup %4534  ;;  %v4485_v41 = vpop.permute.xlu1 %4484 }
 0x3d1   :  { %v1156_v22 = vmul.f32 %v4535_v31, %v4804_v48  ;;  %v4487_v42 = vunpack.i.h.bf16 %v4485_v41  ;;  %v4486_v43 = vunpack.i.l.bf16 %v4485_v41  ;;  %v4384_v41 = vpack.c.bf16 %v32_v40, %v30_v39 }
 0x3d2   :  { %4140 = vmatmul.mubr.msk.f32.vlgmr.msra.gmra.mrb[12].mxu1 %vm235_vm2, %v994_v30 }
 0x3d3   :  { %4148 = vmatpush3.msra.mxu1 %v1159_v25  ;;  %4149 = vmatprep.mubr.msk.f32.mxu1 %vm4613_vm1, %v4612_v12  ;;  %v4537_v23 = vpop.eup %4536  ;;  %v4376_v44 = vpack.c.bf16 %v4487_v42, %v4486_v43  ;;  %v33_v42 = vld [vmem:[%s5238_s3] sm:$0xff]  ;;  %v34_v43 = vld [vmem:[%s5238_s3 + $0x8] sm:$0xff] }
 0x3d4   :  { %4157 = vmatprep.subr.mxu1 %v4612_v12  ;;  %v1322_v33 = vmul.f32 %v4537_v23, %v4819_v61  ;;  %v4539_v34 = vpop.eup %4538 }
 0x3d5   :  { %v1487_v36 = vmul.f32 %v4539_v34, %v4808_v50  ;;  %4377 = vmatprep.subr.bf16.mxu0 %v4376_v44 }
 0x3d6   :  { %4150 = vmatmul.mubr.msk.f32.vlgmr.msra.gmra.mrb[14].mxu1 %vm235_vm2, %v1156_v22  ;;  %4379 = vmatpush3.bf16.msra.mxu0 %v4376_v44  ;;  %v35_v44 = vld [vmem:[%s5238_s3 + $0x10] sm:$0xff] }
 0x3d7   :  { %4158 = vmatpush3.msra.mxu1 %v1324_v32  ;;  %4159 = vmatprep.mubr.msk.f32.mxu1 %vm4613_vm1, %v4612_v12 }
 0x3d8   :  { %4167 = vmatprep.subr.mxu1 %v4612_v12 }
 0x3da   :  { %4160 = vmatmul.mubr.msk.f32.vlgmr.msra.gmra.mrb[16].mxu1 %vm235_vm2, %v1322_v33 }
 0x3db   :  { %4168 = vmatpush3.msra.mxu1 %v1489_v35  ;;  %4169 = vmatprep.mubr.msk.f32.mxu1 %vm4613_vm1, %v4612_v12 }
 0x3de   :  { %4170 = vmatmul.mubr.msk.f32.vlgmr.msra.gmra.mrb[18].mxu1 %vm235_vm2, %v1487_v36 }
 0x43b   :  { %v390_v45 = vpop.f32.mrb[4].mxu1 }
 0x43c   :  { %v4101_v46 = vpop.f32.mrb[5].mxu1 }
 0x43d   :  { %v36_v46 = vld [vmem:[%s5238_s3 + $0x18] sm:$0xff] }
 0x43f   :  { %v556_v47 = vpop.f32.mrb[6].mxu1 }
 0x440   :  { %891 = vrot.lane.b32.xlu0 %v556_v47, %s4623_s18  ;;  %v4111_v48 = vpop.f32.mrb[7].mxu1  ;;  %v4392_v47 = vpack.c.bf16 %v36_v46, %v35_v44  ;;  %v3885_v44 = vld [vmem:[%s5237_s2 + $0x40] sm:$0xff] }
 0x441   :  { %v37_v48 = vld [vmem:[%s5238_s3 + $0x20] sm:$0xff] }
 0x470   :  { %v721_v49 = vpop.f32.mrb[8].mxu1 }
 0x471   :  { %895 = vrot.lane.b32.xlu1 %v721_v49, %s4624_s19  ;;  %v4121_v50 = vpop.f32.mrb[9].mxu1  ;;  %v38_v49 = vld [vmem:[%s5238_s3 + $0x28] sm:$0xff] }
 0x472   :  { %v4396_v50 = vpack.c.bf16 %v38_v49, %v37_v48  ;;  %v3891_v48 = vld [vmem:[%s5237_s2 + $0x70] sm:$0xff] }
 0x474   :  { %v886_v51 = vpop.f32.mrb[10].mxu1 }
 0x475   :  { %899 = vrot.lane.b32.xlu1 %v886_v51, %s4625_s20  ;;  %v4131_v52 = vpop.f32.mrb[11].mxu1 }
 0x4a5   :  { %v1064_v53 = vpop.f32.mrb[12].mxu1 }
 0x4a6   :  { %v4141_v54 = vpop.f32.mrb[13].mxu1 }
 0x4a9   :  { %v1230_v55 = vpop.f32.mrb[14].mxu1 }
 0x4aa   :  { %1565 = vrot.lane.b32.xlu0 %v1230_v55, %s4623_s18  ;;  %v4151_v56 = vpop.f32.mrb[15].mxu1 }
 0x4ad   :  { %v1395_v57 = vpop.f32.mrb[16].mxu1 }
 0x4ae   :  { %1569 = vrot.lane.b32.xlu0 %v1395_v57, %s4624_s19  ;;  %v4161_v59 = vpop.f32.mrb[17].mxu1  ;;  %v1707_v57 = vsub.s32 3, %v4699_v14 }
 0x4af   :  { %v1713_v59 = vsub.s32 4, %v4699_v14 }
 0x4b1   :  { %v1560_v60 = vpop.f32.mrb[18].mxu1 }
 0x4b2   :  { %1573 = vrot.lane.b32.xlu1 %v1560_v60, %s4625_s20  ;;  %v4171_v61 = vpop.f32.mrb[19].mxu1  ;;  %v892_v62 = vpop.permute.xlu0 %891  ;;  %v1708_v60 = vrot.slane %v4707_v16, %v1707_v57 }
 0x4b3   :  { %v902_v63 = vsel %vm235_vm2, %v390_v45, %v892_v62  ;;  %v4388_v45 = vpack.c.bf16 %v34_v43, %v33_v42 }
 0x4b5   :  { %4389 = vmatprep.subr.bf16.mxu0 %v4388_v45 }
 0x4e3   :  { %v896_v58 = vpop.permute.xlu1 %895 }
 0x4e4   :  { %v904_v0 = vsel %vm903_vm3, %v902_v63, %v896_v58  ;;  %v1714_v58 = vrot.slane %v4707_v16, %v1713_v59 }
 0x4e7   :  { %v900_v1 = vpop.permute.xlu1 %899 }
 0x4e8   :  { %v906_v2 = vsel %vm905_vm4, %v904_v0, %v900_v1 }
 0x4e9   :  { %4180 = vmatprep.mubr.msk.f32.mxu0 %vm49_vm0, %v906_v2 }
 0x51c   :  { %v1566_v3 = vpop.permute.xlu0 %1565 }
 0x51d   :  { %v1576_v7 = vsel %vm235_vm2, %v1064_v53, %v1566_v3 }
 0x520   :  { %v1570_v4 = vpop.permute.xlu0 %1569 }
 0x521   :  { %v1577_v11 = vsel %vm903_vm3, %v1576_v7, %v1570_v4  ;;  %v39_v7 = vld [vmem:[%s5238_s3 + $0x30] sm:$0xff] }
 0x524   :  { %v1574_v13 = vpop.permute.xlu1 %1573 }
 0x525   :  { %v1578_v18 = vsel %vm905_vm4, %v1577_v11, %v1574_v13  ;;  %v40_v11 = vld [vmem:[%s5238_s3 + $0x38] sm:$0xff] }
 0x526   :  { %4181 = vmatmul.mubr.msk.f32.vlgmr.msra.gmra.mrb[16].mxu0 %vm49_vm0, %v1578_v18  ;;  %v4400_v13 = vpack.c.bf16 %v40_v11, %v39_v7  ;;  %v1719_v18 = vsub.s32 5, %v4699_v14  ;;  %v4982_v11 = vld [vmem:[%s5239_s4 + $0x10] sm:$0xff] }
 0x527   :  { %4391 = vmatpush3.bf16.msra.mxu0 %v4388_v45  ;;  %v3887_v45 = vld [vmem:[%s5237_s2 + $0x50] sm:$0xff] }
 0x528   :  { %4393 = vmatprep.subr.bf16.mxu0 %v4392_v47  ;;  %v4404_v46 = vpack.c.bf16 %v3887_v45, %v3885_v44 }
 0x52b   :  { %4395 = vmatpush3.bf16.msra.mxu0 %v4392_v47  ;;  %v3889_v47 = vld [vmem:[%s5237_s2 + $0x60] sm:$0xff] }
 0x52c   :  { %4397 = vmatprep.subr.bf16.mxu0 %v4396_v50  ;;  %v4408_v49 = vpack.c.bf16 %v3891_v48, %v3889_v47 }
 0x52f   :  { %4399 = vmatpush3.bf16.msra.mxu0 %v4396_v50 }
 0x530   :  { %4401 = vmatprep.subr.bf16.mxu0 %v4400_v13 }
 0x533   :  { %4403 = vmatpush3.bf16.msra.mxu0 %v4400_v13  ;;  %v1956_v13 = vrot.slane %v4982_v11, %v47_v15  ;;  %v4999_v15 = vpack.i.bf16 %v3887_v45, %v3885_v44 }
 0x534   :  { %4235 = vmatprep.subr.mxu0 %v4612_v12 }
 0x5f9   :  { %v4182_v21 = vpop.f32.mrb[16].mxu0 }
 0x5fa   :  { %v1673_v24 = vadd.f32 %v4182_v21, %v1582_v20  ;;  %v1667_v25 = vpop.f32.mrb[17].mxu0 }
 0x5fb   :  { %v1668_v26 = vadd.f32 %v1667_v25, %v1582_v20  ;;  %v1720_v20 = vrot.slane %v4707_v16, %v1719_v18 }
 0x5fc   :  { %v1677_v27 = vadd.f32 %v1673_v24, %v4686_v9 }
 0x5fd   :  { %v1676_v28 = vadd.f32 %v1668_v26, %v4673_v5  ;;  %v26_v5 = vld [vmem:[%s5237_s2 + $0x8] sm:$0xff] }
 0x5fe   :  { %v1681_v17 = vsel %vm49_vm0, %v1677_v27, 0.0  ;;  %v4380_v38 = vpack.c.bf16 %v28_v37, %v26_v5 }
 0x5ff   :  { %1682 = vadd.xlane.f32.xlu1 %v1681_v17  ;;  %v1678_v29 = vsel %vm49_vm0, %v1676_v28, 0.0  ;;  %v1806_v17 = vsub.s32 6, %v4699_v14 }
 0x600   :  { %1679 = vadd.xlane.f32.xlu0 %v1678_v29  ;;  %4381 = vmatprep.subr.bf16.mxu1 %v4380_v38 }
 0x601   :  { %4383 = vmatpush3.bf16.msra.mxu1 %v4380_v38  ;;  %v1807_v29 = vrot.slane %v4707_v16, %v1806_v17 }
 0x602   :  { %4385 = vmatprep.subr.bf16.mxu1 %v4384_v41 }
 0x605   :  { %4387 = vmatpush3.bf16.msra.mxu1 %v4384_v41 }
 0x606   :  { %4405 = vmatprep.subr.bf16.mxu1 %v4404_v46 }
 0x68c   :  { %v1683_v30 = vpop.xlane.xlu1 %1682 }
 0x68d   :  { %v1686_v31 = vmul.f32 0.03125, %v1683_v30  ;;  %v1680_v22 = vpop.xlane.xlu0 %1679 }
 0x68e   :  { %v1685_v23 = vmul.f32 0.03125, %v1680_v22 }
 0x68f   :  { %v1688_v32 = vsub.f32 %v1677_v27, %v1686_v31 }
 0x690   :  { %v1687_v33 = vsub.f32 %v1676_v28, %v1685_v23 }
 0x691   :  { %v1690_v36 = vmul.f32 %v1688_v32, %v1688_v32 }
 0x692   :  { %v1689_v34 = vmul.f32 %v1687_v33, %v1687_v33 }
 0x693   :  { %v1694_v9 = vsel %vm49_vm0, %v1690_v36, 0.0 }
 0x694   :  { %v1691_v35 = vsel %vm49_vm0, %v1689_v34, 0.0 }
 0x695   :  { %1692 = vadd.xlane.f32.xlu0 %v1691_v35 }
 0x699   :  { %1695 = vadd.xlane.f32.xlu0 %v1694_v9 }
 0x722   :  { %v1693_v51 = vpop.xlane.xlu0 %1692 }
 0x723   :  { %v1697_v52 = vmul.f32 0.03125, %v1693_v51 }
 0x725   :  { %v1699_v53 = vadd.f32 1e-05, %v1697_v52 }
 0x726   :  { %v1696_v54 = vpop.xlane.xlu0 %1695 }
 0x727   :  { %4540 = vrsqrt.f32 %v1699_v53  ;;  %v1698_v55 = vmul.f32 0.03125, %v1696_v54 }
 0x729   :  { %v1700_v56 = vadd.f32 1e-05, %v1698_v55 }
 0x72b   :  { %4542 = vrsqrt.f32 %v1700_v56  ;;  %v1920_v56 = vsub.s32 7, %v4699_v14 }
 0x731   :  { %v4541_v61 = vpop.eup %4540 }
 0x732   :  { %v1703_v62 = vmul.f32 %v4541_v61, %v1687_v33 }
 0x734   :  { %v1709_v63 = vmul.f32 %v1708_v60, %v1703_v62 }
 0x735   :  { %v4543_v0 = vpop.eup %4542 }
 0x736   :  { %v1704_v1 = vmul.f32 %v4543_v0, %v1688_v32  ;;  %v1715_v2 = vadd.f32 %v1714_v58, %v1709_v63  ;;  %v3884_v0 = vld [vmem:[%s5239_s4 + $0x8] ss:$0 sm:$0xff] }
 0x738   :  { %v1710_v3 = vmul.f32 %v1708_v60, %v1704_v1  ;;  %4191 = vmatprep.mubr.msk.f32.mxu1 %vm49_vm0, %v1715_v2  ;;  %v1921_v60 = vrot.slane %v4707_v16, %v1920_v56 }
 0x73a   :  { %v1716_v4 = vadd.f32 %v1714_v58, %v1710_v3 }
 0x73c   :  { %4192 = vmatmul.mubr.msk.f32.vlgmr.msra.gmra.mrb[20].mxu1 %vm49_vm0, %v1716_v4 }
 0x73d   :  { %4407 = vmatpush3.bf16.msra.mxu1 %v4404_v46 }
 0x73e   :  { %4409 = vmatprep.subr.bf16.mxu1 %v4408_v49 }
 0x741   :  { %4411 = vmatpush3.bf16.msra.mxu1 %v4408_v49 }
 0x80f   :  { %v4193_v21 = vpop.f32.mrb[20].mxu1 }
 0x810   :  { %v1799_v24 = vadd.f32 %v4193_v21, %v1720_v20  ;;  %v1793_v25 = vpop.f32.mrb[21].mxu1 }
 0x811   :  { %v1794_v26 = vadd.f32 %v1793_v25, %v1720_v20 }
 0x812   :  { %v1803_v28 = vmax.f32 %v1799_v24, 0.0  ;;  %v5005_v24 = vpack.i.bf16 %v3891_v48, %v3889_v47 }
 0x813   :  { %v1802_v27 = vmax.f32 %v1794_v26, 0.0 }
 0x815   :  { %4210 = vmatprep.mubr.msk.f32.mxu0 %vm1808_vm5, %v1802_v27 }
 0x816   :  { %4211 = vmatmul.mubr.msk.f32.vlgmr.msra.gmra.mrb[18].mxu0 %vm1808_vm5, %v1803_v28 }
 0x817   :  { %4237 = vmatprep.mubr.msk.f32.mxu0 %vm4613_vm1, %v4612_v12 }
 0x8e9   :  { %v4212_v30 = vpop.f32.mrb[18].mxu0 }
 0x8ea   :  { %v1887_v31 = vadd.f32 %v4212_v30, %v1807_v29  ;;  %v1881_v22 = vpop.f32.mrb[19].mxu0 }
 0x8eb   :  { %v1882_v23 = vadd.f32 %v1881_v22, %v1807_v29 }
 0x8ec   :  { %v1891_v32 = vadd.f32 %v1887_v31, %v1716_v4 }
 0x8ed   :  { %v1890_v33 = vadd.f32 %v1882_v23, %v1715_v2 }
 0x8ee   :  { %v1895_v34 = vsel %vm49_vm0, %v1891_v32, 0.0 }
 0x8ef   :  { %1896 = vadd.xlane.f32.xlu0 %v1895_v34  ;;  %v1892_v35 = vsel %vm49_vm0, %v1890_v33, 0.0 }
 0x8f0   :  { %1893 = vadd.xlane.f32.xlu1 %v1892_v35 }
 0x97c   :  { %v1897_v36 = vpop.xlane.xlu0 %1896 }
 0x97d   :  { %v1899_v9 = vmul.f32 0.03125, %v1897_v36  ;;  %v1894_v5 = vpop.xlane.xlu1 %1893 }
 0x97e   :  { %v1898_v37 = vmul.f32 0.03125, %v1894_v5 }
 0x97f   :  { %v1901_v38 = vsub.f32 %v1891_v32, %v1899_v9 }
 0x980   :  { %v1900_v39 = vsub.f32 %v1890_v33, %v1898_v37 }
 0x981   :  { %v1903_v40 = vmul.f32 %v1901_v38, %v1901_v38 }
 0x982   :  { %v1902_v41 = vmul.f32 %v1900_v39, %v1900_v39 }
 0x983   :  { %v1907_v42 = vsel %vm49_vm0, %v1903_v40, 0.0 }
 0x984   :  { %1908 = vadd.xlane.f32.xlu0 %v1907_v42  ;;  %v1904_v43 = vsel %vm49_vm0, %v1902_v41, 0.0 }
 0x985   :  { %1905 = vadd.xlane.f32.xlu1 %v1904_v43 }
 0xa11   :  { %v1909_v50 = vpop.xlane.xlu0 %1908 }
 0xa12   :  { %v1911_v51 = vmul.f32 0.03125, %v1909_v50  ;;  %v1906_v52 = vpop.xlane.xlu1 %1905 }
 0xa13   :  { %v1910_v53 = vmul.f32 0.03125, %v1906_v52 }
 0xa14   :  { %v1913_v54 = vadd.f32 1e-05, %v1911_v51 }
 0xa15   :  { %v1912_v55 = vadd.f32 1e-05, %v1910_v53 }
 0xa16   :  { %4544 = vrsqrt.f32 %v1913_v54 }
 0xa17   :  { %4546 = vrsqrt.f32 %v1912_v55 }
 0xa20   :  { %v4545_v61 = vpop.eup %4544 }
 0xa21   :  { %v4547_v62 = vpop.eup %4546  ;;  %v1917_v58 = vmul.f32 %v4545_v61, %v1901_v38 }
 0xa22   :  { %v1916_v63 = vmul.f32 %v4547_v62, %v1900_v39 }
 0xa23   :  { %v1923_v1 = vmul.f32 %v1921_v60, %v1917_v58 }
 0xa24   :  { %v1922_v2 = vmul.f32 %v1921_v60, %v1916_v63 }
 0xa25   :  { %v4967_v3 = vadd.f32 %v3884_v0, %v1923_v1 }
 0xa26   :  { %v4969_v4 = vadd.f32 %v3884_v0, %v1922_v2 }
 0xa27   :  { %v1952_v16 = vadd.f32 %v4967_v3, %v4691_v10 }
 0xa28   :  { %v1951_v7 = vadd.f32 %v4969_v4, %v4678_v6 }
 0xa2a   :  { %4221 = vmatprep.mubr.msk.f32.mxu1 %vm49_vm0, %v1951_v7 }
 0xa2b   :  { %4222 = vmatmul.mubr.msk.f32.vlgmr.msra.gmra.mrb[22].mxu1 %vm49_vm0, %v1952_v16 }
 0xa2c   :  { %4232 = vmatprep.mubr.msk.f32.mxu1 %vm49_vm0, %v4969_v4 }
 0xafe   :  { %v4223_v6 = vpop.f32.mrb[22].mxu1 }
 0xaff   :  { %v2029_v20 = vpop.f32.mrb[23].mxu1  ;;  %v2035_v10 = vadd.f32 %v4223_v6, %v1956_v13  ;;  %v2041_v6 = vrot.slane %v4982_v11, %v133_v8 }
 0xb00   :  { %v2030_v21 = vadd.f32 %v2029_v20, %v1956_v13 }
 0xb02   :  { %2302 = vrot.lane.b32.xlu0 %v2030_v21, %s4617_s12  ;;  %2140 = vrot.lane.b32.xlu1 %v2030_v21, %s4615_s10 }
 0xb06   :  { %2466 = vrot.lane.b32.xlu0 %v2030_v21, %s4619_s14  ;;  %2300 = vrot.lane.b32.xlu1 %v2030_v21, %s4614_s9 }
 0xb0a   :  { %2631 = vrot.lane.b32.xlu0 %v2030_v21, %s4620_s15  ;;  %2468 = vrot.lane.b32.xlu1 %v2030_v21, %s4616_s11 }
 0xb0e   :  { %2974 = vrot.lane.b32.xlu0 %v2035_v10, %s4617_s12  ;;  %2633 = vrot.lane.b32.xlu1 %v2030_v21, %s4618_s13 }
 0xb12   :  { %3140 = vrot.lane.b32.xlu0 %v2035_v10, %s4616_s11  ;;  %2812 = vrot.lane.b32.xlu1 %v2035_v10, %s4615_s10 }
 0xb16   :  { %3305 = vrot.lane.b32.xlu0 %v2035_v10, %s4618_s13  ;;  %2972 = vrot.lane.b32.xlu1 %v2035_v10, %s4614_s9 }
 0xb1a   :  { %3138 = vrot.lane.b32.xlu1 %v2035_v10, %s4619_s14  ;;  %4489 = vrot.lane.b32.xlu0 %v4999_v15, %s4621_s16 }
 0xb1e   :  { %3303 = vrot.lane.b32.xlu1 %v2035_v10, %s4620_s15 }
 0xb22   :  { %4494 = vrot.lane.b32.xlu1 %v5005_v24, %s4621_s16 }
 0xb74   :  { %v2303_v25 = vpop.permute.xlu0 %2302  ;;  %v2141_v26 = vpop.permute.xlu1 %2140 }
 0xb75   :  { %4236 = vmatpush3.xpose.msk.msra.mxu0 %vm235_vm2, %v2141_v26 }
 0xb76   :  { %4245 = vmatprep.subr.mxu0 %v4612_v12 }
 0xb78   :  { %v2467_v27 = vpop.permute.xlu0 %2466  ;;  %4238 = vmatmul.mubr.msk.f32.vlgmr.msra.gmra.mrb[20].mxu0 %vm235_vm2, %v2030_v21  ;;  %v2301_v28 = vpop.permute.xlu1 %2300 }
 0xb79   :  { %4246 = vmatpush3.xpose.msk.msra.mxu0 %vm235_vm2, %v2303_v25  ;;  %4247 = vmatprep.mubr.msk.f32.mxu0 %vm4613_vm1, %v4612_v12 }
 0xb7a   :  { %4255 = vmatprep.subr.mxu0 %v4612_v12 }
 0xb7c   :  { %v2632_v29 = vpop.permute.xlu0 %2631  ;;  %4248 = vmatmul.mubr.msk.f32.vlgmr.msra.gmra.mrb[22].mxu0 %vm235_vm2, %v2301_v28  ;;  %v2469_v30 = vpop.permute.xlu1 %2468 }
 0xb7d   :  { %4256 = vmatpush3.xpose.msk.msra.mxu0 %vm235_vm2, %v2469_v30  ;;  %4257 = vmatprep.mubr.msk.f32.mxu0 %vm4613_vm1, %v4612_v12 }
 0xb7e   :  { %4265 = vmatprep.subr.mxu0 %v4612_v12 }
 0xb80   :  { %v2975_v31 = vpop.permute.xlu0 %2974  ;;  %4258 = vmatmul.mubr.msk.f32.vlgmr.msra.gmra.mrb[24].mxu0 %vm235_vm2, %v2467_v27  ;;  %v2634_v22 = vpop.permute.xlu1 %2633 }
 0xb81   :  { %4266 = vmatpush3.xpose.msk.msra.mxu0 %vm235_vm2, %v2634_v22  ;;  %4267 = vmatprep.mubr.msk.f32.mxu0 %vm4613_vm1, %v4612_v12 }
 0xb82   :  { %4275 = vmatprep.subr.mxu0 %v4612_v12 }
 0xb84   :  { %v3141_v23 = vpop.permute.xlu0 %3140  ;;  %4268 = vmatmul.mubr.msk.f32.vlgmr.msra.gmra.mrb[26].mxu0 %vm235_vm2, %v2632_v29  ;;  %v2813_v32 = vpop.permute.xlu1 %2812 }
 0xb85   :  { %4276 = vmatpush3.xpose.msk.msra.mxu0 %vm235_vm2, %v2813_v32  ;;  %4277 = vmatprep.mubr.msk.f32.mxu0 %vm4613_vm1, %v4612_v12 }
 0xb86   :  { %4285 = vmatprep.subr.mxu0 %v4612_v12 }
 0xb88   :  { %v3306_v33 = vpop.permute.xlu0 %3305  ;;  %4278 = vmatmul.mubr.msk.f32.vlgmr.msra.gmra.mrb[28].mxu0 %vm235_vm2, %v2035_v10  ;;  %v2973_v34 = vpop.permute.xlu1 %2972 }
 0xb89   :  { %4286 = vmatpush3.xpose.msk.msra.mxu0 %vm235_vm2, %v2975_v31  ;;  %4287 = vmatprep.mubr.msk.f32.mxu0 %vm4613_vm1, %v4612_v12 }
 0xb8a   :  { %4295 = vmatprep.subr.mxu0 %v4612_v12 }
 0xb8c   :  { %4288 = vmatmul.mubr.msk.f32.vlgmr.msra.gmra.mrb[30].mxu0 %vm235_vm2, %v2973_v34  ;;  %v3139_v35 = vpop.permute.xlu1 %3138  ;;  %v4490_v36 = vpop.permute.xlu0 %4489 }
 0xb8d   :  { %4296 = vmatpush3.xpose.msk.msra.mxu0 %vm235_vm2, %v3141_v23  ;;  %4297 = vmatprep.mubr.msk.f32.mxu0 %vm4613_vm1, %v4612_v12  ;;  %v4492_v9 = vunpack.i.h.bf16 %v4490_v36  ;;  %v4491_v5 = vunpack.i.l.bf16 %v4490_v36 }
 0xb8e   :  { %4305 = vmatprep.subr.mxu0 %v4612_v12 }
 0xb8f   :  { %v4412_v37 = vpack.c.bf16 %v4492_v9, %v4491_v5 }
 0xb90   :  { %4298 = vmatmul.mubr.msk.f32.vlgmr.msra.gmra.mrb[32].mxu0 %vm235_vm2, %v3139_v35  ;;  %v3304_v38 = vpop.permute.xlu1 %3303 }
 0xb91   :  { %4306 = vmatpush3.xpose.msk.msra.mxu0 %vm235_vm2, %v3306_v33  ;;  %4307 = vmatprep.mubr.msk.f32.mxu0 %vm4613_vm1, %v4612_v12 }
 0xb92   :  { %4413 = vmatprep.subr.bf16.mxu1 %v4412_v37 }
 0xb93   :  { %4415 = vmatpush3.bf16.msra.mxu1 %v4412_v37 }
 0xb94   :  { %4308 = vmatmul.mubr.msk.f32.vlgmr.msra.gmra.mrb[34].mxu0 %vm235_vm2, %v3304_v38  ;;  %v4495_v39 = vpop.permute.xlu1 %4494 }
 0xb95   :  { %v4497_v40 = vunpack.i.h.bf16 %v4495_v39  ;;  %v4496_v41 = vunpack.i.l.bf16 %v4495_v39 }
 0xb97   :  { %v4416_v42 = vpack.c.bf16 %v4497_v40, %v4496_v41 }
 0xb99   :  { %4417 = vmatprep.subr.bf16.mxu1 %v4416_v42 }
 0xb9a   :  { %4419 = vmatpush3.bf16.msra.mxu1 %v4416_v42 }
 0xb9b   :  { %4240 = vmatprep.subr.mxu1 %v4612_v12 }
 0xb9d   :  { %4233 = vmatmul.mubr.msk.f32.vlgmr.msra.gmra.mrb[24].mxu1 %vm49_vm0, %v4967_v3 }
 0xb9e   :  { %4242 = vmatprep.mubr.msk.f32.mxu1 %vm4613_vm1, %v4612_v12 }
 0xc4b   :  { %v2212_v43 = vpop.f32.mrb[20].mxu0 }
 0xc4c   :  { %v4239_v44 = vpop.f32.mrb[21].mxu0  ;;  %v2216_v45 = vsel %vm235_vm2, %v2212_v43, -inf }
 0xc4d   :  { %2217 = vmax.xlane.f32.xlu0 %v2216_v45 }
 0xc4f   :  { %v2374_v46 = vpop.f32.mrb[22].mxu0 }
 0xc50   :  { %v4249_v47 = vpop.f32.mrb[23].mxu0  ;;  %v2378_v48 = vsel %vm235_vm2, %v2374_v46, -inf }
 0xc51   :  { %2379 = vmax.xlane.f32.xlu1 %v2378_v48 }
 0xc53   :  { %v2540_v49 = vpop.f32.mrb[24].mxu0 }
 0xc54   :  { %v4259_v50 = vpop.f32.mrb[25].mxu0  ;;  %v2544_v51 = vsel %vm235_vm2, %v2540_v49, -inf }
 0xc55   :  { %2545 = vmax.xlane.f32.xlu0 %v2544_v51 }
 0xc57   :  { %v2705_v52 = vpop.f32.mrb[26].mxu0 }
 0xc58   :  { %v4269_v53 = vpop.f32.mrb[27].mxu0  ;;  %v2709_v54 = vsel %vm235_vm2, %v2705_v52, -inf }
 0xc59   :  { %2710 = vmax.xlane.f32.xlu0 %v2709_v54 }
 0xc5b   :  { %v5055_v55 = vpop.f32.mrb[28].mxu0 }
 0xc5c   :  { %v4279_v60 = vpop.f32.mrb[29].mxu0  ;;  %v2888_v61 = vsel %vm235_vm2, %v5055_v55, -inf }
 0xc5d   :  { %2889 = vmax.xlane.f32.xlu1 %v2888_v61 }
 0xc5f   :  { %v3046_v62 = vpop.f32.mrb[30].mxu0 }
 0xc60   :  { %v4289_v58 = vpop.f32.mrb[31].mxu0  ;;  %v3050_v63 = vsel %vm235_vm2, %v3046_v62, -inf }
 0xc61   :  { %3051 = vmax.xlane.f32.xlu0 %v3050_v63 }
 0xc63   :  { %v5060_v0 = vpop.f32.mrb[32].mxu0 }
 0xc64   :  { %v4299_v1 = vpop.f32.mrb[33].mxu0  ;;  %v3216_v2 = vsel %vm235_vm2, %v5060_v0, -inf }
 0xc65   :  { %3217 = vmax.xlane.f32.xlu1 %v3216_v2 }
 0xc67   :  { %v3377_v7 = vpop.f32.mrb[34].mxu0 }
 0xc68   :  { %v4309_v16 = vpop.f32.mrb[35].mxu0  ;;  %v3381_v13 = vsel %vm235_vm2, %v3377_v7, -inf }
 0xc69   :  { %3382 = vmax.xlane.f32.xlu0 %v3381_v13 }
 0xc70   :  { %v4234_v20 = vpop.f32.mrb[24].mxu1 }
 0xc71   :  { %v5068_v21 = vadd.f32 %v4234_v20, %v2041_v6  ;;  %v2130_v10 = vpop.f32.mrb[25].mxu1 }
 0xc72   :  { %v2131_v25 = vadd.f32 %v2130_v10, %v2041_v6 }
 0xc74   :  { %4241 = vmatpush3.msra.mxu1 %v2131_v25 }
 0xc75   :  { %4250 = vmatprep.subr.mxu1 %v4612_v12 }
 0xc76   :  { %2390 = vrot.lane.b32.xlu1 %v2131_v25, %s4614_s9 }
 0xcda   :  { %v2218_v26 = vpop.xlane.xlu0 %2217 }
 0xcdb   :  { %v2219_v27 = vsub.f32 %v2212_v43, %v2218_v26 }
 0xcdd   :  { %v2220_v28 = vmul.f32 1.442695, %v2219_v27 }
 0xcde   :  { %v2380_v29 = vpop.xlane.xlu1 %2379 }
 0xcdf   :  { %4548 = vpow2.f32 %v2220_v28  ;;  %v2381_v30 = vsub.f32 %v2374_v46, %v2380_v29 }
 0xce1   :  { %v2382_v31 = vmul.f32 1.442695, %v2381_v30 }
 0xce2   :  { %v2546_v33 = vpop.xlane.xlu0 %2545 }
 0xce3   :  { %4550 = vpow2.f32 %v2382_v31  ;;  %v2547_v34 = vsub.f32 %v2540_v49, %v2546_v33 }
 0xce5   :  { %v2548_v36 = vmul.f32 1.442695, %v2547_v34 }
 0xce6   :  { %v2711_v35 = vpop.xlane.xlu0 %2710 }
 0xce7   :  { %v2712_v9 = vsub.f32 %v2705_v52, %v2711_v35  ;;  %4552 = vpow2.f32 %v2548_v36 }
 0xce9   :  { %v4549_v22 = vpop.eup %4548  ;;  %v2713_v37 = vmul.f32 1.442695, %v2712_v9 }
 0xcea   :  { %v2222_v8 = vsel %vm235_vm2, %v4549_v22, 0.0  ;;  %v2890_v51 = vpop.xlane.xlu1 %2889 }
 0xceb   :  { %2223 = vadd.xlane.f32.xlu1 %v2222_v8  ;;  %4554 = vpow2.f32 %v2713_v37  ;;  %v2891_v52 = vsub.f32 %v5055_v55, %v2890_v51 }
 0xced   :  { %v4551_v23 = vpop.eup %4550  ;;  %v2892_v54 = vmul.f32 1.442695, %v2891_v52 }
 0xcee   :  { %v2384_v32 = vsel %vm235_vm2, %v4551_v23, 0.0  ;;  %v3052_v5 = vpop.xlane.xlu0 %3051 }
 0xcef   :  { %2385 = vadd.xlane.f32.xlu0 %v2384_v32  ;;  %v3053_v38 = vsub.f32 %v3046_v62, %v3052_v5 }
 0xcf1   :  { %v3054_v40 = vmul.f32 1.442695, %v3053_v38  ;;  %v4553_v43 = vpop.eup %4552 }
 0xcf2   :  { %v2550_v44 = vsel %vm235_vm2, %v4553_v43, 0.0  ;;  %v3218_v53 = vpop.xlane.xlu1 %3217 }
 0xcf3   :  { %4556 = vpow2.f32 %v3054_v40  ;;  %v3219_v60 = vsub.f32 %v5060_v0, %v3218_v53 }
 0xcf5   :  { %v4555_v45 = vpop.eup %4554  ;;  %v3220_v61 = vmul.f32 1.442695, %v3219_v60 }
 0xcf6   :  { %v3383_v39 = vpop.xlane.xlu0 %3382  ;;  %v2715_v46 = vsel %vm235_vm2, %v4555_v45, 0.0  ;;  %v2391_v55 = vpop.permute.xlu1 %2390 }
 0xcf7   :  { %v3384_v41 = vsub.f32 %v3377_v7, %v3383_v39 }
 0xcf9   :  { %v3385_v42 = vmul.f32 1.442695, %v3384_v41 }
 0xcfb   :  { %4558 = vpow2.f32 %v3385_v42 }
 0xcfc   :  { %2720 = vrot.lane.b32.xlu1 %v2131_v25, %s4620_s15  ;;  %4560 = vpow2.f32 %v2892_v54 }
 0xcfd   :  { %v5078_v47 = vpop.eup %4556  ;;  %4562 = vpow2.f32 %v3220_v61 }
 0xcfe   :  { %v3056_v48 = vsel %vm235_vm2, %v5078_v47, 0.0 }
 0xd05   :  { %2555 = vrot.lane.b32.xlu0 %v2131_v25, %s4619_s14  ;;  %v5082_v49 = vpop.eup %4558 }
 0xd06   :  { %v3387_v50 = vsel %vm235_vm2, %v5082_v49, 0.0  ;;  %v4561_v62 = vpop.eup %4560 }
 0xd07   :  { %v2894_v58 = vsel %vm235_vm2, %v4561_v62, 0.0  ;;  %v5093_v63 = vpop.eup %4562 }
 0xd08   :  { %v3222_v1 = vsel %vm235_vm2, %v5093_v63, 0.0 }
 0xd20   :  { %2551 = vadd.xlane.f32.xlu1 %v2550_v44 }
 0xd24   :  { %2716 = vadd.xlane.f32.xlu0 %v2715_v46 }
 0xd28   :  { %3057 = vadd.xlane.f32.xlu0 %v3056_v48 }
 0xd2c   :  { %3388 = vadd.xlane.f32.xlu0 %v3387_v50 }
 0xd31   :  { %3062 = vrot.lane.b32.xlu1 %v5068_v21, %s4614_s9  ;;  %s4588_s9 = scalar_lea.vmem %s3840_s26, 256 }
 0xd32   :  { %p4589_p0 = scmp.ne.s32.totalorder %s3840_s26, %s4588_s9  ;;  %p4594_p2 = scmp.lt.s32.totalorder %s4588_s9, %s4588_s9 }
 0xd34   :  { %p4595_p3 = por %p4594_p2, %p4593_p1 }
 0xd36   :  { %p4596_p4 = pnand %p4595_p3, %p4589_p0 }
 0xd42   :  { %3227 = vrot.lane.b32.xlu0 %v5068_v21, %s4619_s14 }
 0xd46   :  { %4499 = vrot.lane.b32.xlu0 %v4999_v15, %s4622_s17 }
 0xd55   :  { %2895 = vadd.xlane.f32.xlu1 %v2894_v58 }
 0xd59   :  { %3223 = vadd.xlane.f32.xlu1 %v3222_v1 }
 0xd6a   :  { %3392 = vrot.lane.b32.xlu1 %v5068_v21, %s4620_s15 }
 0xd6e   :  { %4504 = vrot.lane.b32.xlu1 %v5005_v24, %s4622_s17 }
 0xd78   :  { %v2224_v2 = vpop.xlane.xlu1 %2223 }
 0xd79   :  { %4564 = vrcp.f32 %v2224_v2 }
 0xd7c   :  { %v2386_v0 = vpop.xlane.xlu0 %2385  ;;  %v2721_v10 = vpop.permute.xlu1 %2720 }
 0xd7d   :  { %4566 = vrcp.f32 %v2386_v0 }
 0xd80   :  { %v2556_v20 = vpop.permute.xlu0 %2555 }
 0xd83   :  { %v4565_v7 = vpop.eup %4564 }
 0xd84   :  { %v2226_v16 = vmul.f32 %v4565_v7, %v4549_v22 }
 0xd86   :  { %4243 = vmatmul.mubr.msk.f32.vlgmr.msra.gmra.mrb[26].mxu1 %vm235_vm2, %v2226_v16 }
 0xd87   :  { %v4567_v13 = vpop.eup %4566  ;;  %4251 = vmatpush3.msra.mxu1 %v2391_v55  ;;  %4252 = vmatprep.mubr.msk.f32.mxu1 %vm4613_vm1, %v4612_v12 }
 0xd88   :  { %v2388_v6 = vmul.f32 %v4567_v13, %v4551_v23  ;;  %4260 = vmatprep.subr.mxu1 %v4612_v12 }
 0xd8a   :  { %4253 = vmatmul.mubr.msk.f32.vlgmr.msra.gmra.mrb[28].mxu1 %vm235_vm2, %v2388_v6 }
 0xd8b   :  { %4261 = vmatpush3.msra.mxu1 %v2556_v20  ;;  %4262 = vmatprep.mubr.msk.f32.mxu1 %vm4613_vm1, %v4612_v12 }
 0xd8c   :  { %4270 = vmatprep.subr.mxu1 %v4612_v12 }
 0xdad   :  { %v2552_v25 = vpop.xlane.xlu1 %2551 }
 0xdae   :  { %4568 = vrcp.f32 %v2552_v25 }
 0xdb1   :  { %v2717_v26 = vpop.xlane.xlu0 %2716  ;;  %v3063_v31 = vpop.permute.xlu1 %3062 }
 0xdb2   :  { %4570 = vrcp.f32 %v2717_v26 }
 0xdb5   :  { %v3058_v22 = vpop.xlane.xlu0 %3057 }
 0xdb8   :  { %v4569_v27 = vpop.eup %4568 }
 0xdb9   :  { %v2554_v28 = vmul.f32 %v4569_v27, %v4553_v43  ;;  %v3389_v32 = vpop.xlane.xlu0 %3388 }
 0xdbb   :  { %4263 = vmatmul.mubr.msk.f32.vlgmr.msra.gmra.mrb[30].mxu1 %vm235_vm2, %v2554_v28  ;;  %v3486_v28 = vrot.slane %v4982_v11, %v1581_v19 }
 0xdbc   :  { %v4571_v29 = vpop.eup %4570  ;;  %4271 = vmatpush3.msra.mxu1 %v2721_v10  ;;  %4272 = vmatprep.mubr.msk.f32.mxu1 %vm4613_vm1, %v4612_v12 }
 0xdbd   :  { %v2719_v30 = vmul.f32 %v4571_v29, %v4555_v45  ;;  %4280 = vmatprep.subr.mxu1 %v4612_v12  ;;  %v3228_v35 = vpop.permute.xlu0 %3227 }
 0xdbf   :  { %4273 = vmatmul.mubr.msk.f32.vlgmr.msra.gmra.mrb[32].mxu1 %vm235_vm2, %v2719_v30 }
 0xdc0   :  { %4281 = vmatpush3.msra.mxu1 %v5068_v21  ;;  %4282 = vmatprep.mubr.msk.f32.mxu1 %vm4613_vm1, %v4612_v12 }
 0xdc1   :  { %4290 = vmatprep.subr.mxu1 %v4612_v12  ;;  %v4500_v38 = vpop.permute.xlu0 %4499 }
 0xdc2   :  { %v4502_v39 = vunpack.i.h.bf16 %v4500_v38  ;;  %v4501_v40 = vunpack.i.l.bf16 %v4500_v38 }
 0xdc4   :  { %v4420_v41 = vpack.c.bf16 %v4502_v39, %v4501_v40  ;;  %v3890_v39 = vld [vmem:[%s5237_s2 + $0x68] sm:$0xff]  ;;  %v3892_v40 = vld [vmem:[%s5237_s2 + $0x78] sm:$0xff] }
 0xdc6   :  { %4421 = vmatprep.subr.bf16.mxu0 %v4420_v41 }
 0xdc7   :  { %4423 = vmatpush3.bf16.msra.mxu0 %v4420_v41  ;;  %v4432_v41 = vpack.c.bf16 %v3892_v40, %v3890_v39 }
 0xde2   :  { %v2896_v8 = vpop.xlane.xlu1 %2895 }
 0xde3   :  { %4572 = vrcp.f32 %v2896_v8 }
 0xde4   :  { %4574 = vrcp.f32 %v3058_v22 }
 0xde6   :  { %v3224_v23 = vpop.xlane.xlu1 %3223 }
 0xde7   :  { %4576 = vrcp.f32 %v3224_v23 }
 0xde8   :  { %4578 = vrcp.f32 %v3389_v32 }
 0xdea   :  { %v3393_v5 = vpop.permute.xlu1 %3392 }
 0xded   :  { %v4573_v21 = vpop.eup %4572 }
 0xdee   :  { %v2898_v33 = vmul.f32 %v4573_v21, %v4561_v62  ;;  %v4575_v34 = vpop.eup %4574  ;;  %v4505_v42 = vpop.permute.xlu1 %4504 }
 0xdef   :  { %v3060_v15 = vmul.f32 %v4575_v34, %v5078_v47  ;;  %v4507_v43 = vunpack.i.h.bf16 %v4505_v42  ;;  %v4506_v44 = vunpack.i.l.bf16 %v4505_v42  ;;  %v3893_v42 = vld [vmem:[%s5238_s3 + $0x40] sm:$0xff] }
 0xdf0   :  { %4283 = vmatmul.mubr.msk.f32.vlgmr.msra.gmra.mrb[34].mxu1 %vm235_vm2, %v2898_v33 }
 0xdf1   :  { %4291 = vmatpush3.msra.mxu1 %v3063_v31  ;;  %4292 = vmatprep.mubr.msk.f32.mxu1 %vm4613_vm1, %v4612_v12  ;;  %v4577_v24 = vpop.eup %4576  ;;  %v4424_v45 = vpack.c.bf16 %v4507_v43, %v4506_v44  ;;  %v3894_v43 = vld [vmem:[%s5238_s3 + $0x48] sm:$0xff]  ;;  %v3895_v44 = vld [vmem:[%s5238_s3 + $0x50] sm:$0xff] }
 0xdf2   :  { %4300 = vmatprep.subr.mxu1 %v4612_v12  ;;  %v3226_v36 = vmul.f32 %v4577_v24, %v5093_v63  ;;  %v4579_v9 = vpop.eup %4578 }
 0xdf3   :  { %v3391_v37 = vmul.f32 %v4579_v9, %v5082_v49  ;;  %4425 = vmatprep.subr.bf16.mxu0 %v4424_v45 }
 0xdf4   :  { %4293 = vmatmul.mubr.msk.f32.vlgmr.msra.gmra.mrb[36].mxu1 %vm235_vm2, %v3060_v15  ;;  %4427 = vmatpush3.bf16.msra.mxu0 %v4424_v45  ;;  %v4436_v45 = vpack.c.bf16 %v3894_v43, %v3893_v42 }
 0xdf5   :  { %4301 = vmatpush3.msra.mxu1 %v3228_v35  ;;  %4302 = vmatprep.mubr.msk.f32.mxu1 %vm4613_vm1, %v4612_v12 }
 0xdf6   :  { %4310 = vmatprep.subr.mxu1 %v4612_v12  ;;  %4437 = vmatprep.subr.bf16.mxu0 %v4436_v45 }
 0xdf8   :  { %4303 = vmatmul.mubr.msk.f32.vlgmr.msra.gmra.mrb[38].mxu1 %vm235_vm2, %v3226_v36 }
 0xdf9   :  { %4311 = vmatpush3.msra.mxu1 %v3393_v5  ;;  %4312 = vmatprep.mubr.msk.f32.mxu1 %vm4613_vm1, %v4612_v12 }
 0xdfc   :  { %4313 = vmatmul.mubr.msk.f32.vlgmr.msra.gmra.mrb[40].mxu1 %vm235_vm2, %v3391_v37  ;;  %v3888_v37 = vld [vmem:[%s5237_s2 + $0x58] sm:$0xff] }
 0xe59   :  { %v2296_v46 = vpop.f32.mrb[26].mxu1 }
 0xe5a   :  { %v4244_v47 = vpop.f32.mrb[27].mxu1 }
 0xe5d   :  { %v2462_v48 = vpop.f32.mrb[28].mxu1 }
 0xe5e   :  { %2797 = vrot.lane.b32.xlu0 %v2462_v48, %s4623_s18  ;;  %v4254_v12 = vpop.f32.mrb[29].mxu1  ;;  %v3897_v48 = vld [vmem:[%s5238_s3 + $0x60] sm:$0xff] }
 0xe5f   :  { %v3898_v12 = vld [vmem:[%s5238_s3 + $0x68] sm:$0xff] }
 0xe8e   :  { %v2627_v49 = vpop.f32.mrb[30].mxu1 }
 0xe8f   :  { %2801 = vrot.lane.b32.xlu1 %v2627_v49, %s4624_s19  ;;  %v4264_v50 = vpop.f32.mrb[31].mxu1  ;;  %v4444_v49 = vpack.c.bf16 %v3898_v12, %v3897_v48 }
 0xe92   :  { %v2792_v51 = vpop.f32.mrb[32].mxu1 }
 0xe93   :  { %2805 = vrot.lane.b32.xlu1 %v2792_v51, %s4625_s20  ;;  %v4274_v52 = vpop.f32.mrb[33].mxu1 }
 0xec3   :  { %v2968_v53 = vpop.f32.mrb[34].mxu1 }
 0xec4   :  { %v4284_v54 = vpop.f32.mrb[35].mxu1 }
 0xec7   :  { %v3134_v60 = vpop.f32.mrb[36].mxu1 }
 0xec8   :  { %3469 = vrot.lane.b32.xlu0 %v3134_v60, %s4623_s18  ;;  %v4294_v61 = vpop.f32.mrb[37].mxu1 }
 0xec9   :  { %v3611_v61 = vrot.slane %v4982_v11, %v1707_v57  ;;  %v3899_v57 = vld [vmem:[%s5238_s3 + $0x70] sm:$0xff] }
 0xecb   :  { %v3299_v62 = vpop.f32.mrb[38].mxu1 }
 0xecc   :  { %3473 = vrot.lane.b32.xlu0 %v3299_v62, %s4624_s19  ;;  %v4304_v58 = vpop.f32.mrb[39].mxu1 }
 0xecf   :  { %v3464_v63 = vpop.f32.mrb[40].mxu1 }
 0xed0   :  { %3477 = vrot.lane.b32.xlu1 %v3464_v63, %s4625_s20  ;;  %v4314_v1 = vpop.f32.mrb[41].mxu1  ;;  %v2798_v55 = vpop.permute.xlu0 %2797  ;;  %v3617_v63 = vrot.slane %v4982_v11, %v1713_v59  ;;  %v3623_v59 = vrot.slane %v4982_v11, %v1719_v18 }
 0xed1   :  { %v2808_v0 = vsel %vm235_vm2, %v2296_v46, %v2798_v55  ;;  %v3896_v46 = vld [vmem:[%s5238_s3 + $0x58] sm:$0xff] }
 0xed2   :  { %v4440_v47 = vpack.c.bf16 %v3896_v46, %v3895_v44  ;;  %v3937_v46 = vld [vmem:[%s5239_s4 + $0x18] ss:$0 sm:$0xff] }
 0xf01   :  { %v2802_v2 = vpop.permute.xlu1 %2801 }
 0xf02   :  { %v2809_v7 = vsel %vm903_vm3, %v2808_v0, %v2802_v2 }
 0xf05   :  { %v2806_v16 = vpop.permute.xlu1 %2805 }
 0xf06   :  { %v2810_v13 = vsel %vm905_vm4, %v2809_v7, %v2806_v16 }
 0xf07   :  { %4323 = vmatprep.mubr.msk.f32.mxu0 %vm49_vm0, %v2810_v13  ;;  %v3900_v13 = vld [vmem:[%s5238_s3 + $0x78] sm:$0xff] }
 0xf3a   :  { %v3470_v6 = vpop.permute.xlu0 %3469 }
 0xf3b   :  { %v3480_v10 = vsel %vm235_vm2, %v2968_v53, %v3470_v6  ;;  %v4448_v6 = vpack.c.bf16 %v3900_v13, %v3899_v57 }
 0xf3e   :  { %v3474_v20 = vpop.permute.xlu0 %3473 }
 0xf3f   :  { %v3481_v25 = vsel %vm903_vm3, %v3480_v10, %v3474_v20 }
 0xf42   :  { %v3478_v26 = vpop.permute.xlu1 %3477 }
 0xf43   :  { %v3482_v27 = vsel %vm905_vm4, %v3481_v25, %v3478_v26 }
 0xf44   :  { %4324 = vmatmul.mubr.msk.f32.vlgmr.msra.gmra.mrb[36].mxu0 %vm49_vm0, %v3482_v27 }
 0xf45   :  { %4439 = vmatpush3.bf16.msra.mxu0 %v4436_v45 }
 0xf46   :  { %4441 = vmatprep.subr.bf16.mxu0 %v4440_v47 }
 0xf49   :  { %4443 = vmatpush3.bf16.msra.mxu0 %v4440_v47 }
 0xf4a   :  { %4445 = vmatprep.subr.bf16.mxu0 %v4444_v49 }
 0xf4d   :  { %4447 = vmatpush3.bf16.msra.mxu0 %v4444_v49 }
 0xf4e   :  { %4449 = vmatprep.subr.bf16.mxu0 %v4448_v6 }
 0xf51   :  { %4451 = vmatpush3.bf16.msra.mxu0 %v4448_v6 }
0x1017   :  { %v4325_v29 = vpop.f32.mrb[36].mxu0 }
0x1018   :  { %v3577_v30 = vadd.f32 %v4325_v29, %v3486_v28  ;;  %v3571_v31 = vpop.f32.mrb[37].mxu0  ;;  %v3710_v29 = vrot.slane %v4982_v11, %v1806_v17 }
0x1019   :  { %v3572_v22 = vadd.f32 %v3571_v31, %v3486_v28 }
0x101a   :  { %v3581_v8 = vadd.f32 %v3577_v30, %v4967_v3 }
0x101b   :  { %v3580_v23 = vadd.f32 %v3572_v22, %v4969_v4  ;;  %v3886_v4 = vld [vmem:[%s5237_s2 + $0x48] sm:$0xff] }
0x101c   :  { %v3585_v32 = vsel %vm49_vm0, %v3581_v8, 0.0  ;;  %v4428_v38 = vpack.c.bf16 %v3888_v37, %v3886_v4 }
0x101d   :  { %3586 = vadd.xlane.f32.xlu1 %v3585_v32  ;;  %v3582_v21 = vsel %vm49_vm0, %v3580_v23, 0.0 }
0x101e   :  { %3583 = vadd.xlane.f32.xlu0 %v3582_v21  ;;  %4429 = vmatprep.subr.bf16.mxu1 %v4428_v38 }
0x101f   :  { %4431 = vmatpush3.bf16.msra.mxu1 %v4428_v38 }
0x1020   :  { %4433 = vmatprep.subr.bf16.mxu1 %v4432_v41 }
0x1023   :  { %4435 = vmatpush3.bf16.msra.mxu1 %v4432_v41  ;;  %v3823_v41 = vrot.slane %v4982_v11, %v1920_v56 }
0x10aa   :  { %v3587_v33 = vpop.xlane.xlu1 %3586 }
0x10ab   :  { %v3589_v34 = vmul.f32 0.03125, %v3587_v33  ;;  %v3584_v15 = vpop.xlane.xlu0 %3583 }
0x10ac   :  { %v3588_v24 = vmul.f32 0.03125, %v3584_v15 }
0x10ad   :  { %v3591_v35 = vsub.f32 %v3581_v8, %v3589_v34 }
0x10ae   :  { %v3590_v19 = vsub.f32 %v3580_v23, %v3588_v24 }
0x10af   :  { %v3593_v5 = vmul.f32 %v3591_v35, %v3591_v35 }
0x10b0   :  { %v3592_v36 = vmul.f32 %v3590_v19, %v3590_v19 }
0x10b1   :  { %v3597_v3 = vsel %vm49_vm0, %v3593_v5, 0.0 }
0x10b2   :  { %v3594_v9 = vsel %vm49_vm0, %v3592_v36, 0.0 }
0x10b3   :  { %3595 = vadd.xlane.f32.xlu0 %v3594_v9 }
0x10b7   :  { %3598 = vadd.xlane.f32.xlu0 %v3597_v3 }
0x1140   :  { %v3596_v50 = vpop.xlane.xlu0 %3595 }
0x1141   :  { %v3600_v51 = vmul.f32 0.03125, %v3596_v50 }
0x1143   :  { %v3602_v52 = vadd.f32 1e-05, %v3600_v51 }
0x1144   :  { %v3599_v53 = vpop.xlane.xlu0 %3598 }
0x1145   :  { %4580 = vrsqrt.f32 %v3602_v52  ;;  %v3601_v54 = vmul.f32 0.03125, %v3599_v53 }
0x1147   :  { %v3603_v60 = vadd.f32 1e-05, %v3601_v54 }
0x1149   :  { %4582 = vrsqrt.f32 %v3603_v60 }
0x114f   :  { %v4581_v62 = vpop.eup %4580 }
0x1150   :  { %v3606_v58 = vmul.f32 %v4581_v62, %v3590_v19 }
0x1152   :  { %v3612_v1 = vmul.f32 %v3611_v61, %v3606_v58 }
0x1153   :  { %v4583_v55 = vpop.eup %4582 }
0x1154   :  { %v3607_v2 = vmul.f32 %v4583_v55, %v3591_v35  ;;  %v3618_v0 = vadd.f32 %v3617_v63, %v3612_v1 }
0x1156   :  { %v3613_v7 = vmul.f32 %v3611_v61, %v3607_v2  ;;  %4334 = vmatprep.mubr.msk.f32.mxu1 %vm49_vm0, %v3618_v0 }
0x1158   :  { %v3619_v16 = vadd.f32 %v3617_v63, %v3613_v7 }
0x115a   :  { %4335 = vmatmul.mubr.msk.f32.vlgmr.msra.gmra.mrb[42].mxu1 %vm49_vm0, %v3619_v16 }
0x122d   :  { %v4336_v20 = vpop.f32.mrb[42].mxu1 }
0x122e   :  { %v3702_v10 = vadd.f32 %v4336_v20, %v3623_v59  ;;  %v3696_v25 = vpop.f32.mrb[43].mxu1 }
0x122f   :  { %v3697_v26 = vadd.f32 %v3696_v25, %v3623_v59 }
0x1230   :  { %v3706_v28 = vmax.f32 %v3702_v10, 0.0 }
0x1231   :  { %v3705_v27 = vmax.f32 %v3697_v26, 0.0 }
0x1233   :  { %4353 = vmatprep.mubr.msk.f32.mxu0 %vm1808_vm5, %v3705_v27 }
0x1234   :  { %4354 = vmatmul.mubr.msk.f32.vlgmr.msra.gmra.mrb[38].mxu0 %vm1808_vm5, %v3706_v28 }
0x1307   :  { %v4355_v30 = vpop.f32.mrb[38].mxu0 }
0x1308   :  { %v3789_v31 = vadd.f32 %v4355_v30, %v3710_v29  ;;  %v3783_v22 = vpop.f32.mrb[39].mxu0 }
0x1309   :  { %v3784_v8 = vadd.f32 %v3783_v22, %v3710_v29 }
0x130a   :  { %v3793_v23 = vadd.f32 %v3789_v31, %v3619_v16 }
0x130b   :  { %v3792_v18 = vadd.f32 %v3784_v8, %v3618_v0 }
0x130c   :  { %v3797_v32 = vsel %vm49_vm0, %v3793_v23, 0.0 }
0x130d   :  { %3798 = vadd.xlane.f32.xlu0 %v3797_v32  ;;  %v3794_v21 = vsel %vm49_vm0, %v3792_v18, 0.0 }
0x130e   :  { %3795 = vadd.xlane.f32.xlu1 %v3794_v21 }
0x139a   :  { %v3799_v33 = vpop.xlane.xlu0 %3798 }
0x139b   :  { %v3801_v34 = vmul.f32 0.03125, %v3799_v33  ;;  %v3796_v15 = vpop.xlane.xlu1 %3795 }
0x139c   :  { %v3800_v24 = vmul.f32 0.03125, %v3796_v15 }
0x139d   :  { %v3803_v35 = vsub.f32 %v3793_v23, %v3801_v34 }
0x139e   :  { %v3802_v19 = vsub.f32 %v3792_v18, %v3800_v24 }
0x139f   :  { %v3805_v36 = vmul.f32 %v3803_v35, %v3803_v35 }
0x13a0   :  { %v3804_v17 = vmul.f32 %v3802_v19, %v3802_v19 }
0x13a1   :  { %v3809_v9 = vsel %vm49_vm0, %v3805_v36, 0.0 }
0x13a2   :  { %3810 = vadd.xlane.f32.xlu0 %v3809_v9  ;;  %v3806_v5 = vsel %vm49_vm0, %v3804_v17, 0.0 }
0x13a3   :  { %3807 = vadd.xlane.f32.xlu1 %v3806_v5 }
0x142f   :  { %v3811_v3 = vpop.xlane.xlu0 %3810 }
0x1430   :  { %v3813_v4 = vmul.f32 0.03125, %v3811_v3  ;;  %v3808_v37 = vpop.xlane.xlu1 %3807 }
0x1431   :  { %v3812_v38 = vmul.f32 0.03125, %v3808_v37 }
0x1432   :  { %v3815_v39 = vadd.f32 1e-05, %v3813_v4 }
0x1433   :  { %v3814_v40 = vadd.f32 1e-05, %v3812_v38 }
0x1434   :  { %4584 = vrsqrt.f32 %v3815_v39 }
0x1435   :  { %4586 = vrsqrt.f32 %v3814_v40 }
0x143e   :  { %v4585_v42 = vpop.eup %4584 }
0x143f   :  { %v4587_v43 = vpop.eup %4586  ;;  %v3819_v44 = vmul.f32 %v4585_v42, %v3803_v35 }
0x1440   :  { %v3818_v45 = vmul.f32 %v4587_v43, %v3802_v19 }
0x1441   :  { %v3825_v47 = vmul.f32 %v3823_v41, %v3819_v44 }
0x1442   :  { %v3824_v48 = vmul.f32 %v3823_v41, %v3818_v45 }
0x1443   :  { %v3831_v12 = vadd.f32 %v3937_v46, %v3825_v47 }
0x1444   :  { %v3830_v49 = vadd.f32 %v3937_v46, %v3824_v48 }
0x1445   :  { %3833 = vst.msk [vmem:[#allocation2 + $0x8] sm:$0xff] %vm49_vm0, %v3831_v12 }
0x1446   :  { %3832 = vst.msk [vmem:[#allocation2] sm:$0xff] %vm49_vm0, %v3830_v49 }
0x1447   :  { %4599 = shalt.err (!%p4596_p4)
}
0x1448   :  { %s4600_s11 = scalar_lea.hbm %s5240_s5, 256 }
0x1449   :  { %p4601_p5 = scmp.ne.s32.totalorder %s5240_s5, %s4600_s11  ;;  %p4604_p6 = scmp.lt.u32.totalorder %s4600_s11, %s5240_s5 }
0x144b   :  { %p4606_p7 = pnand %p4604_p6, %p4601_p5 }
0x144d   :  { %4609 = shalt.err (!%p4606_p7)
}
0x144e   :  { %s4627_s16 = smov 128  }
0x144f   :  { %3845 = dma.vmem_to_hbm [thread:$0]  %s3840_s26, 256, %s5240_s5, [#allocation3], %s4627_s16, %s4627_s16, %s4623_s18  }
0x1450   :  { %4610 = dma.done.wait [#allocation3], 256  }
0x1451   :  { %4611 = vsyncadd [#allocation3], 4294967040 }
0x1452   :  { %3849 = vsyncpa [#allocation3], 1 }

</bundles_post_ra>
